<compile_context>
chip_gen: v7x
topology: tpu7x:2x2x1
jax: 0.10.0
libtpu: 0.0.40
codegen_flags: <defaults>
</compile_context>

<pallas_src>
import functools

import jax
import jax.numpy as jnp
import numpy as np
from jax import lax
from jax.experimental import pallas as pl
from jax.experimental.pallas import tpu as pltpu


def set2set_kernel(x_ref, w_ref, b_ref, out_ref, *, steps: int):
    """One grid step processes TG graphs end-to-end (all processing steps).

    x_ref  : (TG, N, C)   node features for TG contiguous graphs
    w_ref  : (3C, 4C)     fused gate weights for [q, r, h] -> gates
                          (rows: W_ih[:, :C].T ; W_ih[:, C:].T ; W_hh.T)
    b_ref  : (1, 4C)      b_ih + b_hh
    out_ref: (TG, 2C)     q_star = [q, r]
    Gate order (PyTorch LSTM): i, f, g, o.
    """
    x = x_ref[...]                                    # (TG, N, C)
    w = w_ref[...]                                    # (3C, 4C)
    TG, N, C = x.shape

    # Hoisted once: JAX does not CSE broadcast_in_dim inside the step loop.
    b = jnp.broadcast_to(b_ref[...], (TG, 4 * C))

    zeros = jnp.zeros((TG, C), jnp.float32)

    def step(_, carry):
        h, c, q, r = carry

        # ---- single LSTM time-step, fused gate matmul (one MXU push) ----
        qrh = jnp.concatenate([q, r, h], axis=-1)     # (TG, 3C)
        gates = jnp.dot(qrh, w, preferred_element_type=jnp.float32) + b
        # NOTE: with C=32, 4C == 128, so each gate slice is a sub-vreg lane
        # window; acceptable while 4C == one vreg lane width.
        i_g = jax.nn.sigmoid(gates[:, 0 * C:1 * C])
        f_g = jax.nn.sigmoid(gates[:, 1 * C:2 * C])
        g_g = jnp.tanh(gates[:, 2 * C:3 * C])
        o_g = jax.nn.sigmoid(gates[:, 3 * C:4 * C])
        c_new = f_g * c + i_g * g_g
        h_new = o_g * jnp.tanh(c_new)
        q_new = h_new                                 # (TG, C)

        # ---- attention scores on the MXU (batched over graphs) ----------
        # e[g, n] = <x[g, n, :], q[g, :]>
        q3 = q_new[:, None, :]                        # (TG, 1, C)
        e = jnp.einsum('gmc,gnc->gmn', q3, x,
                       preferred_element_type=jnp.float32)   # (TG, 1, N)

        # ---- per-graph softmax over nodes (lane axis) --------------------
        e = e - jnp.max(e, axis=-1, keepdims=True)
        p = jnp.exp(e)
        # Exact divide (pl.reciprocal(approx=True) risks the test tolerance).
        a = p / jnp.sum(p, axis=-1, keepdims=True)    # (TG, 1, N)

        # ---- r = per-graph weighted sum of node features, on the MXU -----
        r3 = jnp.einsum('gmn,gnc->gmc', a, x,
                        preferred_element_type=jnp.float32)  # (TG, 1, C)
        r_new = r3.reshape(TG, C)

        return h_new, c_new, q_new, r_new

    h, c, q, r = lax.fori_loop(0, steps, step,
                               (zeros, zeros, zeros, zeros),
                               unroll=True)

    # Single lane-dense store of q_star = [q, r]  (no wrapper concatenate).
    out_ref[...] = jnp.concatenate([q, r], axis=-1)


def set2set_forward(x_gnc, w_ih, w_hh, b_ih, b_hh, processing_steps,
                    tile_g: int = 8):
    """x_gnc: (G, N, C). Returns q_star: (G, 2C)."""
    G, N, C = x_gnc.shape
    assert w_ih.shape == (4 * C, 2 * C)
    assert w_hh.shape == (4 * C, C)
    assert G % tile_g == 0, "G must be a multiple of the graph tile size"

    # Fused gate weights: gates = [q, r, h] @ w_all + b.
    # w_ih.T is already [wq; wr] stacked along rows (q_star = [q, r]).
    w_all = jnp.concatenate([w_ih.T, w_hh.T], axis=0)        # (3C, 4C)
    b = (b_ih + b_hh).reshape(1, 4 * C)                      # (1, 4C)

    kernel = functools.partial(set2set_kernel, steps=processing_steps)

    q_star = pl.pallas_call(
        kernel,
        grid=(G // tile_g,),
        in_specs=[
            pl.BlockSpec((tile_g, N, C), lambda g: (g, 0, 0)),   # x tile
            pl.BlockSpec((3 * C, 4 * C), lambda g: (0, 0)),      # fused weights
            pl.BlockSpec((1, 4 * C), lambda g: (0, 0)),          # bias
        ],
        out_specs=pl.BlockSpec((tile_g, 2 * C), lambda g: (g, 0)),
        out_shape=jax.ShapeDtypeStruct((G, 2 * C), jnp.float32),
        compiler_params=pltpu.CompilerParams(
            # Graph tiles are independent -> shard across TCs (v7x megacore).
            dimension_semantics=("parallel",),
            # Explicit budget: resident footprint is ~2 * TG*N*C*4 B per input
            # buffer regardless of total G; 32 MiB is safe on v5e/v6e/v7x.
            vmem_limit_bytes=32 * 1024 * 1024,
        ),
    )(x_gnc, w_all, b)

    return q_star


def set2set_reference(x_gnc, w_ih, w_hh, b_ih, b_hh, processing_steps):
    """Pure-JAX reference (same math as the PyTorch module)."""
    G, N, C = x_gnc.shape
    h = jnp.zeros((G, C), jnp.float32)
    c = jnp.zeros((G, C), jnp.float32)
    q_star = jnp.zeros((G, 2 * C), jnp.float32)
    for _ in range(processing_steps):
        gates = q_star @ w_ih.T + h @ w_hh.T + b_ih + b_hh
        i_g = jax.nn.sigmoid(gates[:, 0 * C:1 * C])
        f_g = jax.nn.sigmoid(gates[:, 1 * C:2 * C])
        g_g = jnp.tanh(gates[:, 2 * C:3 * C])
        o_g = jax.nn.sigmoid(gates[:, 3 * C:4 * C])
        c = f_g * c + i_g * g_g
        h = o_g * jnp.tanh(c)
        q = h
        e = jnp.sum(x_gnc * q[:, None, :], axis=-1)
        a = jax.nn.softmax(e, axis=-1)
        r = jnp.sum(a[:, :, None] * x_gnc, axis=1)
        q_star = jnp.concatenate([q, r], axis=-1)
    return q_star


if __name__ == "__main__":
    # Small TPU-friendly shapes consistent with the module: G graphs with N
    # contiguous nodes each, C = in_channels (LSTM hidden), 2C = LSTM input.
    # (The original spec uses 7 graphs x 330 nodes; here G is a multiple of
    # the graph tile so the grid exercises real tiling.)
    G, N, C = 16, 64, 32
    processing_steps = 3

    key = jax.random.PRNGKey(0)
    kx, k1, k2, k3, k4 = jax.random.split(key, 5)

    # Node features: PyTorch layout is [num_nodes, C] with a contiguous batch
    # vector; reshape to [G, N, C].
    x_flat = jax.random.normal(kx, (G * N, C), dtype=jnp.float32)
    x_gnc = x_flat.reshape(G, N, C)

    # Deterministic LSTM params, PyTorch-style uniform(-1/sqrt(C), 1/sqrt(C)).
    bound = 1.0 / np.sqrt(C)
    w_ih = jax.random.uniform(k1, (4 * C, 2 * C), jnp.float32, -bound, bound)
    w_hh = jax.random.uniform(k2, (4 * C, C), jnp.float32, -bound, bound)
    b_ih = jax.random.uniform(k3, (4 * C,), jnp.float32, -bound, bound)
    b_hh = jax.random.uniform(k4, (4 * C,), jnp.float32, -bound, bound)

    q_star = set2set_forward(x_gnc, w_ih, w_hh, b_ih, b_hh, processing_steps)
    q_star = jax.block_until_ready(q_star)

    ref = set2set_reference(x_gnc, w_ih, w_hh, b_ih, b_hh, processing_steps)
    # Slightly relaxed vs 1e-5: MXU-contraction reduction order differs from
    # the VPU reference reductions.
    np.testing.assert_allclose(np.asarray(q_star), np.asarray(ref),
                               rtol=1e-4, atol=1e-4)
    assert q_star.shape == (G, 2 * C)

    print("KERNEL_OK")
</pallas_src>

<mosaic_0001>
module attributes {stable_mosaic.version = 11 : i64} {
  func.func @set2set_kernel(%arg0: i32, %arg1: memref<8x64x32xf32, #tpu.memory_space<vmem>>, %arg2: memref<96x128xf32, #tpu.memory_space<vmem>>, %arg3: memref<1x128xf32, #tpu.memory_space<vmem>>, %arg4: memref<8x64xf32, #tpu.memory_space<vmem>>) attributes {dimension_semantics = [#tpu.dimension_semantics<parallel>], iteration_bounds = array<i64: 2>, scalar_prefetch = 0 : i64, scratch_operands = 0 : i64, tpu.core_type = #tpu.core_type<tc>, window_params = [{transform_indices = @transform_0, window_bounds = array<i64: 8, 64, 32>}, {pipeline_mode = #tpu.pipeline_mode<synchronous>, transform_indices = @transform_1, window_bounds = array<i64: 96, 128>}, {pipeline_mode = #tpu.pipeline_mode<synchronous>, transform_indices = @transform_2, window_bounds = array<i64: 1, 128>}, {transform_indices = @transform_3, window_bounds = array<i64: 8, 64>}]} {
    %c0 = arith.constant 0 : index
    %c0_0 = arith.constant 0 : index
    %c0_1 = arith.constant 0 : index
    %0 = vector.load %arg1[%c0, %c0_0, %c0_1] : memref<8x64x32xf32, #tpu.memory_space<vmem>>, vector<8x64x32xf32>
    %c0_2 = arith.constant 0 : index
    %c0_3 = arith.constant 0 : index
    %1 = vector.load %arg2[%c0_2, %c0_3] : memref<96x128xf32, #tpu.memory_space<vmem>>, vector<96x128xf32>
    %c0_4 = arith.constant 0 : index
    %c0_5 = arith.constant 0 : index
    %2 = vector.load %arg3[%c0_4, %c0_5] : memref<1x128xf32, #tpu.memory_space<vmem>>, vector<1x128xf32>
    %3 = vector.shape_cast %2 : vector<1x128xf32> to vector<1x128xf32>
    %4 = vector.broadcast %3 : vector<1x128xf32> to vector<8x128xf32>
    %cst = arith.constant 0.000000e+00 : f32
    %5 = vector.broadcast %cst : f32 to vector<8x32xf32>
    %c0_i32 = arith.constant 0 : i32
    %6 = tpu.concatenate %5, %5, %5 in 1 : vector<8x32xf32>, vector<8x32xf32>, vector<8x32xf32> -> vector<8x96xf32>
    %cst_6 = arith.constant dense<0.000000e+00> : vector<8x128xf32>
    %7 = tpu.matmul %6, %1, %cst_6 {dimension_numbers = #tpu.dot_dimension_numbers<[1], [0], [0], [1], [0, 0, 1, 1], [], []>} : vector<8x96xf32>, vector<96x128xf32>, vector<8x128xf32> -> vector<8x128xf32>
    %8 = arith.addf %7, %4 : vector<8x128xf32>
    %9 = vector.extract_strided_slice %8 {offsets = [0, 0], sizes = [8, 32], strides = [1, 1]} : vector<8x128xf32> to vector<8x32xf32>
    %10 = arith.negf %9 : vector<8x32xf32>
    %11 = math.exp %10 : vector<8x32xf32>
    %cst_7 = arith.constant 1.000000e+00 : f32
    %12 = vector.broadcast %cst_7 : f32 to vector<8x32xf32>
    %13 = arith.addf %12, %11 : vector<8x32xf32>
    %14 = arith.divf %12, %13 : vector<8x32xf32>
    %15 = vector.extract_strided_slice %8 {offsets = [0, 32], sizes = [8, 32], strides = [1, 1]} : vector<8x128xf32> to vector<8x32xf32>
    %16 = arith.negf %15 : vector<8x32xf32>
    %17 = math.exp %16 : vector<8x32xf32>
    %cst_8 = arith.constant 1.000000e+00 : f32
    %18 = vector.broadcast %cst_8 : f32 to vector<8x32xf32>
    %19 = arith.addf %18, %17 : vector<8x32xf32>
    %20 = arith.divf %18, %19 : vector<8x32xf32>
    %21 = vector.extract_strided_slice %8 {offsets = [0, 64], sizes = [8, 32], strides = [1, 1]} : vector<8x128xf32> to vector<8x32xf32>
    %22 = math.tanh %21 : vector<8x32xf32>
    %23 = vector.extract_strided_slice %8 {offsets = [0, 96], sizes = [8, 32], strides = [1, 1]} : vector<8x128xf32> to vector<8x32xf32>
    %24 = arith.negf %23 : vector<8x32xf32>
    %25 = math.exp %24 : vector<8x32xf32>
    %cst_9 = arith.constant 1.000000e+00 : f32
    %26 = vector.broadcast %cst_9 : f32 to vector<8x32xf32>
    %27 = arith.addf %26, %25 : vector<8x32xf32>
    %28 = arith.divf %26, %27 : vector<8x32xf32>
    %29 = arith.mulf %20, %5 : vector<8x32xf32>
    %30 = arith.mulf %14, %22 : vector<8x32xf32>
    %31 = arith.addf %29, %30 : vector<8x32xf32>
    %32 = math.tanh %31 : vector<8x32xf32>
    %33 = arith.mulf %28, %32 : vector<8x32xf32>
    %34 = vector.shape_cast %33 : vector<8x32xf32> to vector<8x1x32xf32>
    "tpu.trace_start"() <{level = 10 : i32, message = "gmc,gnc->gmn"}> : () -> ()
    %cst_10 = arith.constant dense<0.000000e+00> : vector<8x1x64xf32>
    %35 = tpu.matmul %34, %0, %cst_10 {dimension_numbers = #tpu.dot_dimension_numbers<[2], [2], [1], [1], [0, 0, 0, 1, 1, 1], [0], [0]>} : vector<8x1x32xf32>, vector<8x64x32xf32>, vector<8x1x64xf32> -> vector<8x1x64xf32>
    "tpu.trace_stop"() : () -> ()
    %cst_11 = arith.constant dense<0xFF800000> : vector<8x1xf32>
    %36 = vector.multi_reduction <maximumf>, %35, %cst_11 [2] : vector<8x1x64xf32> to vector<8x1xf32>
    %37 = vector.shape_cast %36 : vector<8x1xf32> to vector<8x1x1xf32>
    %38 = vector.broadcast %37 : vector<8x1x1xf32> to vector<8x1x64xf32>
    %39 = arith.subf %35, %38 : vector<8x1x64xf32>
    %40 = math.exp %39 : vector<8x1x64xf32>
    %cst_12 = arith.constant dense<0.000000e+00> : vector<8x1xf32>
    %41 = vector.multi_reduction <add>, %40, %cst_12 [2] : vector<8x1x64xf32> to vector<8x1xf32>
    %42 = vector.shape_cast %41 : vector<8x1xf32> to vector<8x1x1xf32>
    %43 = vector.broadcast %42 : vector<8x1x1xf32> to vector<8x1x64xf32>
    %44 = arith.divf %40, %43 : vector<8x1x64xf32>
    "tpu.trace_start"() <{level = 10 : i32, message = "gmn,gnc->gmc"}> : () -> ()
    %cst_13 = arith.constant dense<0.000000e+00> : vector<8x1x32xf32>
    %45 = tpu.matmul %44, %0, %cst_13 {dimension_numbers = #tpu.dot_dimension_numbers<[2], [1], [1], [2], [0, 0, 0, 1, 1, 2], [0], [0]>} : vector<8x1x64xf32>, vector<8x64x32xf32>, vector<8x1x32xf32> -> vector<8x1x32xf32>
    "tpu.trace_stop"() : () -> ()
    %46 = vector.shape_cast %45 : vector<8x1x32xf32> to vector<8x32xf32>
    %c1_i32 = arith.constant 1 : i32
    %47 = tpu.concatenate %33, %46, %33 in 1 : vector<8x32xf32>, vector<8x32xf32>, vector<8x32xf32> -> vector<8x96xf32>
    %cst_14 = arith.constant dense<0.000000e+00> : vector<8x128xf32>
    %48 = tpu.matmul %47, %1, %cst_14 {dimension_numbers = #tpu.dot_dimension_numbers<[1], [0], [0], [1], [0, 0, 1, 1], [], []>} : vector<8x96xf32>, vector<96x128xf32>, vector<8x128xf32> -> vector<8x128xf32>
    %49 = arith.addf %48, %4 : vector<8x128xf32>
    %50 = vector.extract_strided_slice %49 {offsets = [0, 0], sizes = [8, 32], strides = [1, 1]} : vector<8x128xf32> to vector<8x32xf32>
    %51 = arith.negf %50 : vector<8x32xf32>
    %52 = math.exp %51 : vector<8x32xf32>
    %cst_15 = arith.constant 1.000000e+00 : f32
    %53 = vector.broadcast %cst_15 : f32 to vector<8x32xf32>
    %54 = arith.addf %53, %52 : vector<8x32xf32>
    %55 = arith.divf %53, %54 : vector<8x32xf32>
    %56 = vector.extract_strided_slice %49 {offsets = [0, 32], sizes = [8, 32], strides = [1, 1]} : vector<8x128xf32> to vector<8x32xf32>
    %57 = arith.negf %56 : vector<8x32xf32>
    %58 = math.exp %57 : vector<8x32xf32>
    %cst_16 = arith.constant 1.000000e+00 : f32
    %59 = vector.broadcast %cst_16 : f32 to vector<8x32xf32>
    %60 = arith.addf %59, %58 : vector<8x32xf32>
    %61 = arith.divf %59, %60 : vector<8x32xf32>
    %62 = vector.extract_strided_slice %49 {offsets = [0, 64], sizes = [8, 32], strides = [1, 1]} : vector<8x128xf32> to vector<8x32xf32>
    %63 = math.tanh %62 : vector<8x32xf32>
    %64 = vector.extract_strided_slice %49 {offsets = [0, 96], sizes = [8, 32], strides = [1, 1]} : vector<8x128xf32> to vector<8x32xf32>
    %65 = arith.negf %64 : vector<8x32xf32>
    %66 = math.exp %65 : vector<8x32xf32>
    %cst_17 = arith.constant 1.000000e+00 : f32
    %67 = vector.broadcast %cst_17 : f32 to vector<8x32xf32>
    %68 = arith.addf %67, %66 : vector<8x32xf32>
    %69 = arith.divf %67, %68 : vector<8x32xf32>
    %70 = arith.mulf %61, %31 : vector<8x32xf32>
    %71 = arith.mulf %55, %63 : vector<8x32xf32>
    %72 = arith.addf %70, %71 : vector<8x32xf32>
    %73 = math.tanh %72 : vector<8x32xf32>
    %74 = arith.mulf %69, %73 : vector<8x32xf32>
    %75 = vector.shape_cast %74 : vector<8x32xf32> to vector<8x1x32xf32>
    "tpu.trace_start"() <{level = 10 : i32, message = "gmc,gnc->gmn"}> : () -> ()
    %cst_18 = arith.constant dense<0.000000e+00> : vector<8x1x64xf32>
    %76 = tpu.matmul %75, %0, %cst_18 {dimension_numbers = #tpu.dot_dimension_numbers<[2], [2], [1], [1], [0, 0, 0, 1, 1, 1], [0], [0]>} : vector<8x1x32xf32>, vector<8x64x32xf32>, vector<8x1x64xf32> -> vector<8x1x64xf32>
    "tpu.trace_stop"() : () -> ()
    %cst_19 = arith.constant dense<0xFF800000> : vector<8x1xf32>
    %77 = vector.multi_reduction <maximumf>, %76, %cst_19 [2] : vector<8x1x64xf32> to vector<8x1xf32>
    %78 = vector.shape_cast %77 : vector<8x1xf32> to vector<8x1x1xf32>
    %79 = vector.broadcast %78 : vector<8x1x1xf32> to vector<8x1x64xf32>
    %80 = arith.subf %76, %79 : vector<8x1x64xf32>
    %81 = math.exp %80 : vector<8x1x64xf32>
    %cst_20 = arith.constant dense<0.000000e+00> : vector<8x1xf32>
    %82 = vector.multi_reduction <add>, %81, %cst_20 [2] : vector<8x1x64xf32> to vector<8x1xf32>
    %83 = vector.shape_cast %82 : vector<8x1xf32> to vector<8x1x1xf32>
    %84 = vector.broadcast %83 : vector<8x1x1xf32> to vector<8x1x64xf32>
    %85 = arith.divf %81, %84 : vector<8x1x64xf32>
    "tpu.trace_start"() <{level = 10 : i32, message = "gmn,gnc->gmc"}> : () -> ()
    %cst_21 = arith.constant dense<0.000000e+00> : vector<8x1x32xf32>
    %86 = tpu.matmul %85, %0, %cst_21 {dimension_numbers = #tpu.dot_dimension_numbers<[2], [1], [1], [2], [0, 0, 0, 1, 1, 2], [0], [0]>} : vector<8x1x64xf32>, vector<8x64x32xf32>, vector<8x1x32xf32> -> vector<8x1x32xf32>
    "tpu.trace_stop"() : () -> ()
    %87 = vector.shape_cast %86 : vector<8x1x32xf32> to vector<8x32xf32>
    %c2_i32 = arith.constant 2 : i32
    %88 = tpu.concatenate %74, %87, %74 in 1 : vector<8x32xf32>, vector<8x32xf32>, vector<8x32xf32> -> vector<8x96xf32>
    %cst_22 = arith.constant dense<0.000000e+00> : vector<8x128xf32>
    %89 = tpu.matmul %88, %1, %cst_22 {dimension_numbers = #tpu.dot_dimension_numbers<[1], [0], [0], [1], [0, 0, 1, 1], [], []>} : vector<8x96xf32>, vector<96x128xf32>, vector<8x128xf32> -> vector<8x128xf32>
    %90 = arith.addf %89, %4 : vector<8x128xf32>
    %91 = vector.extract_strided_slice %90 {offsets = [0, 0], sizes = [8, 32], strides = [1, 1]} : vector<8x128xf32> to vector<8x32xf32>
    %92 = arith.negf %91 : vector<8x32xf32>
    %93 = math.exp %92 : vector<8x32xf32>
    %cst_23 = arith.constant 1.000000e+00 : f32
    %94 = vector.broadcast %cst_23 : f32 to vector<8x32xf32>
    %95 = arith.addf %94, %93 : vector<8x32xf32>
    %96 = arith.divf %94, %95 : vector<8x32xf32>
    %97 = vector.extract_strided_slice %90 {offsets = [0, 32], sizes = [8, 32], strides = [1, 1]} : vector<8x128xf32> to vector<8x32xf32>
    %98 = arith.negf %97 : vector<8x32xf32>
    %99 = math.exp %98 : vector<8x32xf32>
    %cst_24 = arith.constant 1.000000e+00 : f32
    %100 = vector.broadcast %cst_24 : f32 to vector<8x32xf32>
    %101 = arith.addf %100, %99 : vector<8x32xf32>
    %102 = arith.divf %100, %101 : vector<8x32xf32>
    %103 = vector.extract_strided_slice %90 {offsets = [0, 64], sizes = [8, 32], strides = [1, 1]} : vector<8x128xf32> to vector<8x32xf32>
    %104 = math.tanh %103 : vector<8x32xf32>
    %105 = vector.extract_strided_slice %90 {offsets = [0, 96], sizes = [8, 32], strides = [1, 1]} : vector<8x128xf32> to vector<8x32xf32>
    %106 = arith.negf %105 : vector<8x32xf32>
    %107 = math.exp %106 : vector<8x32xf32>
    %cst_25 = arith.constant 1.000000e+00 : f32
    %108 = vector.broadcast %cst_25 : f32 to vector<8x32xf32>
    %109 = arith.addf %108, %107 : vector<8x32xf32>
    %110 = arith.divf %108, %109 : vector<8x32xf32>
    %111 = arith.mulf %102, %72 : vector<8x32xf32>
    %112 = arith.mulf %96, %104 : vector<8x32xf32>
    %113 = arith.addf %111, %112 : vector<8x32xf32>
    %114 = math.tanh %113 : vector<8x32xf32>
    %115 = arith.mulf %110, %114 : vector<8x32xf32>
    %116 = vector.shape_cast %115 : vector<8x32xf32> to vector<8x1x32xf32>
    "tpu.trace_start"() <{level = 10 : i32, message = "gmc,gnc->gmn"}> : () -> ()
    %cst_26 = arith.constant dense<0.000000e+00> : vector<8x1x64xf32>
    %117 = tpu.matmul %116, %0, %cst_26 {dimension_numbers = #tpu.dot_dimension_numbers<[2], [2], [1], [1], [0, 0, 0, 1, 1, 1], [0], [0]>} : vector<8x1x32xf32>, vector<8x64x32xf32>, vector<8x1x64xf32> -> vector<8x1x64xf32>
    "tpu.trace_stop"() : () -> ()
    %cst_27 = arith.constant dense<0xFF800000> : vector<8x1xf32>
    %118 = vector.multi_reduction <maximumf>, %117, %cst_27 [2] : vector<8x1x64xf32> to vector<8x1xf32>
    %119 = vector.shape_cast %118 : vector<8x1xf32> to vector<8x1x1xf32>
    %120 = vector.broadcast %119 : vector<8x1x1xf32> to vector<8x1x64xf32>
    %121 = arith.subf %117, %120 : vector<8x1x64xf32>
    %122 = math.exp %121 : vector<8x1x64xf32>
    %cst_28 = arith.constant dense<0.000000e+00> : vector<8x1xf32>
    %123 = vector.multi_reduction <add>, %122, %cst_28 [2] : vector<8x1x64xf32> to vector<8x1xf32>
    %124 = vector.shape_cast %123 : vector<8x1xf32> to vector<8x1x1xf32>
    %125 = vector.broadcast %124 : vector<8x1x1xf32> to vector<8x1x64xf32>
    %126 = arith.divf %122, %125 : vector<8x1x64xf32>
    "tpu.trace_start"() <{level = 10 : i32, message = "gmn,gnc->gmc"}> : () -> ()
    %cst_29 = arith.constant dense<0.000000e+00> : vector<8x1x32xf32>
    %127 = tpu.matmul %126, %0, %cst_29 {dimension_numbers = #tpu.dot_dimension_numbers<[2], [1], [1], [2], [0, 0, 0, 1, 1, 2], [0], [0]>} : vector<8x1x64xf32>, vector<8x64x32xf32>, vector<8x1x32xf32> -> vector<8x1x32xf32>
    "tpu.trace_stop"() : () -> ()
    %128 = vector.shape_cast %127 : vector<8x1x32xf32> to vector<8x32xf32>
    %129 = tpu.concatenate %115, %128 in 1 : vector<8x32xf32>, vector<8x32xf32> -> vector<8x64xf32>
    %c0_30 = arith.constant 0 : index
    %c0_31 = arith.constant 0 : index
    %130 = vector.load %arg4[%c0_30, %c0_31] : memref<8x64xf32, #tpu.memory_space<vmem>>, vector<8x64xf32>
    tpu.vector_store %arg4[%c0_30, %c0_31], %129 {strides = array<i32>} : memref<8x64xf32, #tpu.memory_space<vmem>>, vector<8x64xf32>,
    return
  }
  func.func @transform_0(%arg0: i32) -> (i32, i32, i32) {
    %c0_i32 = arith.constant 0 : i32
    %c0_i32_0 = arith.constant 0 : i32
    %c0_i32_1 = arith.constant 0 : i32
    return %arg0, %c0_i32, %c0_i32_0 : i32, i32, i32
  }
  func.func @transform_1(%arg0: i32) -> (i32, i32) {
    %c0_i32 = arith.constant 0 : i32
    %c0_i32_0 = arith.constant 0 : i32
    %c0_i32_1 = arith.constant 0 : i32
    return %c0_i32, %c0_i32_0 : i32, i32
  }
  func.func @transform_2(%arg0: i32) -> (i32, i32) {
    %c0_i32 = arith.constant 0 : i32
    %c0_i32_0 = arith.constant 0 : i32
    %c0_i32_1 = arith.constant 0 : i32
    return %c0_i32, %c0_i32_0 : i32, i32
  }
  func.func @transform_3(%arg0: i32) -> (i32, i32) {
    %c0_i32 = arith.constant 0 : i32
    %c0_i32_0 = arith.constant 0 : i32
    return %arg0, %c0_i32 : i32, i32
  }
}

</mosaic_0001>

<bundles_post_ra>
// kernel: tpu_custom_call.1
= control target key start
LH: loop header
LB: loop body
LE: loop exit
PB: predicated region body
PF: predicated region fallthrough
CT: control target
= control target key end

     0   :  { %8 = vsyncpa [#allocation3], 0  ;;  %s8995_s0 = inlined_call_operand.vmem [shape: f32[16,64,32], index: 0, kind: input, shape index: {}]   ;;  %s8996_s1 = inlined_call_operand.vmem [shape: f32[96,128], index: 1, kind: input, shape index: {}]   ;;  %s8997_s2 = inlined_call_operand.vmem [shape: f32[1,128], index: 2, kind: input, shape index: {}]   ;;  %s8998_s3 = inlined_call_operand.hbm [shape: f32[16,64], index: 3, kind: output, shape index: {}]  }
   0x1   :  { %10 = vsyncpa [#allocation3 + $0x1], 0  ;;  %s7666_s12 = smov 0   ;;  %s7668_s13 = smov 0  }
   0x2   :  { %s7670_s14 = smov 0   ;;  %s7672_s15 = smov 0  }
   0x3 LB: > { %s7687_s16 = sadd.s32 4294967295, %s7636_s15   ;;  %s4958_s17 = sadd.s32 4294967294, %s7636_s15   ;;  %s7636_s15 = sphi %s7672_s15, %s9030_s15   ;;  %s7632_s14 = sphi %s7670_s14, %s9029_s14   ;;  %s7628_s13 = sphi %s7668_s13, %s9028_s13   ;;  %s7624_s12 = sphi %s7666_s12, %s9027_s12  }
   0x4   : > { %s7691_s18 = sadd.s32 1, %s7636_s15   ;;  %s91_s19 = sadd.s32 1, %s7632_s14 }
   0x5   : > { %s88_s20 = ssub.s32 %s7636_s15, %s7691_s18  ;;  %p101_p0 = scmp.ne.s32.totalorder %s7632_s14, %s7628_s13 }
   0x6   : > { %p89_p1 = scmp.eq.s32.totalorder %s88_s20, 0  ;;  %p102_p2 = scmp.eq.s32.totalorder %s7687_s16, 1 }
   0x7   : > { %p107_p3 = scmp.ne.s32.totalorder %s7628_s13, %s7624_s12  ;;  %p108_p4 = scmp.eq.s32.totalorder %s4958_s17, 1 }
   0x8   : > { %s7702_s21 = scalar_select %p89_p1, %s7632_s14, %s91_s19  }
   0x9   : > { %p7704_p5 = por %p102_p2, %p101_p0  ;;  %p7708_p6 = por %p108_p4, %p107_p3 }
   0xa   : > { %p4961_p7 = scmp.ge.s32.totalorder %s7636_s15, 1  ;;  %p142_p8 = scmp.lt.s32.totalorder %s7636_s15, 3 }
   0xc   : > { %p143_p9 = pnand %p4961_p7, %p142_p8 }
   0xe   : > { %146 = sbr.rel (%p143_p9) target bundleno = 5058 (0x13c2), region = 32 }
  0x15   : > { %v238_v0 = vld [vmem:[%s8996_s1] sm:$0xff]  ;;  %v239_v1 = vld [vmem:[%s8996_s1 + $0x8] sm:$0xff]  ;;  %v240_v2 = vld [vmem:[%s8996_s1 + $0x10] sm:$0xff]  ;;  %v8999_v3 = vmov 0.0|0.0   ;;  %vm7639_vm0 = vmmov 0   ;;  %v9001_v6 = vmov 0.0   ;;  %v360_v62 = vlaneseq }
  0x16   : > { %6681 = vmatprep.subr.bf16.mxu0 %v8999_v3  ;;  %v7724_v4 = vpack.c.bf16 %v239_v1, %v238_v0  ;;  %v241_v5 = vld [vmem:[%s8996_s1 + $0x18] sm:$0xff]  ;;  %5712 = vmatprep.mubr.msk.f32.mxu0 %vm7639_vm0, %v9001_v6  ;;  %v242_v8 = vld [vmem:[%s8996_s1 + $0x20] sm:$0xff]  ;;  %v243_v9 = vld [vmem:[%s8996_s1 + $0x28] sm:$0xff]  ;;  %s7641_s5 = smov 64   ;;  %s7642_s6 = smov 32   ;;  %vm411_vm1 = vcmask 261120  }
  0x17   : > { %6699 = vmatprep.subr.bf16.mxu1 %v8999_v3  ;;  %5731 = vmatprep.mubr.msk.f32.mxu1 %vm7639_vm0, %v9001_v6  ;;  %v7735_v7 = vpack.c.bf16 %v241_v5, %v240_v2  ;;  %v7745_v10 = vpack.c.bf16 %v243_v9, %v242_v8  ;;  %v244_v11 = vld [vmem:[%s8996_s1 + $0x30] sm:$0xff]  ;;  %v245_v12 = vld [vmem:[%s8996_s1 + $0x38] sm:$0xff]  ;;  %v246_v14 = vld [vmem:[%s8996_s1 + $0x40] sm:$0xff]  ;;  %s4963_s7 = sshll.u32 %s7687_s16, 3  ;;  %v7643_v60 = vmov 1966171168  }
  0x18   : > { %6683 = vmatpush3.bf16.msra.mxu0 %v7724_v4  ;;  %v7755_v13 = vpack.c.bf16 %v245_v12, %v244_v11  ;;  %v247_v15 = vld [vmem:[%s8996_s1 + $0x48] sm:$0xff]  ;;  %v248_v17 = vld [vmem:[%s8996_s1 + $0x50] sm:$0xff]  ;;  %v249_v18 = vld [vmem:[%s8996_s1 + $0x58] sm:$0xff]  ;;  %p168_p10 = scmp.lt.s32.totalorder %s4963_s7, 15  ;;  %v358_v61 = vunpack.c.l.s4 %v7643_v60  ;;  %v361_v0 = vshrl.u32 %v360_v62, 7  ;;  %vm1222_vm3 = vcmask 516096  }
  0x19   : > { %6684 = vmatprep.subr.bf16.mxu0 %v8999_v3  ;;  %v7765_v16 = vpack.c.bf16 %v247_v15, %v246_v14  ;;  %v7775_v19 = vpack.c.bf16 %v249_v18, %v248_v17  ;;  %v4966_v20 = vld [vmem:[%s8997_s2] ss:$0 sm:$0xff]  ;;  %vm7804_vm2 = vmpackc.low %vm411_vm1, %vm411_vm1  ;;  %vm1311_vm4 = vcmask 523264   ;;  %vm1908_vm5 = vcmask 1041409   ;;  %s7644_s17 = smov 96   ;;  %s164_s24 = sand.u32 1, %s7628_s13  }
  0x1a   : > { %s9032_s7 = smov (!%p168_p10, %s4963_s7), 15  ;;  %v359_v63 = vunpack.c.0.s8 %v358_v61  ;;  %v7881_v11 = vsub.s32 0, %v361_v0  ;;  %vm1911_vm6 = vcmask 1042434   ;;  %vm1914_vm7 = vcmask 1043459   ;;  %s4962_s25 = sshll.u32 %s164_s24, 3 }
  0x1b   : > { %s5216_s8 = sshll.u32 %s9032_s7, 6  ;;  %vm1917_vm8 = vcmask 1044484   ;;  %vm1920_vm9 = vcmask 1045509   ;;  %vm1923_vm10 = vcmask 1046534   ;;  %vm1926_vm11 = vcmask 1047559   ;;  %s5213_s26 = sshll.u32 %s7687_s16, 7 }
  0x1c   : > { %6686 = vmatpush3.bf16.msra.mxu0 %v7735_v7  ;;  %s7800_s11 = scalar_lea.vmem %s8995_s0, %s5216_s8  ;;  %v7872_v1 = vsub.s32 %v359_v63, %v361_v0  ;;  %9017 = vst [vmem:[#allocation7_spill] sm:$0xff] %v7881_v11  ;;  %vm257_vm12 = vcmask 785408   ;;  %s166_s27 = scalar_lea.vmem [#allocation2], %s4962_s25 }
  0x1d   : > { %6687 = vmatprep.subr.bf16.mxu0 %v8999_v3  ;;  %v174_v36 = vld [vmem:[%s7800_s11] sm:$0xff]  ;;  %v175_v37 = vld [vmem:[%s7800_s11 + $0x8] sm:$0xff]  ;;  %v176_v42 = vld [vmem:[%s7800_s11 + $0x10] sm:$0xff]  ;;  %s4899_s28 = sshll.u32 %s166_s27, 4  ;;  %s8951_s4 = scalar_lea.hbm %s8998_s3, %s5213_s26  ;;  %s8953_s28 = int_to_ptr.vmem [resolvable:$true] %s4899_s28 }
  0x1e   : > { %v182_v38 = vld [vmem:[%s7800_s11 + $0x40] sm:$0xff]  ;;  %v7811_v39 = vpack.c.bf16 %v175_v37, %v174_v36  ;;  %v183_v40 = vld [vmem:[%s7800_s11 + $0x48] sm:$0xff]  ;;  %v177_v43 = vld [vmem:[%s7800_s11 + $0x18] sm:$0xff]  ;;  %9016 = vst [vmem:[#allocation6_spill] sm:$0xff] %v7872_v1  ;;  %s7574_s16 = scalar_lea.vmem %s8953_s28, 128 }
  0x1f   : > { %v7814_v41 = vpack.c.bf16 %v183_v40, %v182_v38  ;;  %v184_v44 = vld [vmem:[%s7800_s11 + $0x50] sm:$0xff]  ;;  %v185_v45 = vld [vmem:[%s7800_s11 + $0x58] sm:$0xff]  ;;  %v7828_v46 = vpack.c.bf16 %v177_v43, %v176_v42  ;;  %v178_v48 = vld [vmem:[%s7800_s11 + $0x20] sm:$0xff]  ;;  %p7575_p11 = scmp.ne.s32.totalorder %s8953_s28, %s7574_s16 }
  0x20   : > { %6689 = vmatpush3.bf16.msra.mxu0 %v7745_v10  ;;  %6702 = vmatpush3.bf16.xpose.msk.msra.mxu1 %vm7804_vm2, %v7811_v39  ;;  %v7830_v47 = vpack.c.bf16 %v185_v45, %v184_v44  ;;  %v179_v49 = vld [vmem:[%s7800_s11 + $0x28] sm:$0xff]  ;;  %v186_v50 = vld [vmem:[%s7800_s11 + $0x60] sm:$0xff]  ;;  %v180_v54 = vld [vmem:[%s7800_s11 + $0x30] sm:$0xff] }
  0x21   : > { %6690 = vmatprep.subr.bf16.mxu0 %v8999_v3  ;;  %6703 = vmatprep.subr.bf16.mxu1 %v8999_v3  ;;  %v187_v51 = vld [vmem:[%s7800_s11 + $0x68] sm:$0xff]  ;;  %v7844_v52 = vpack.c.bf16 %v179_v49, %v178_v48  ;;  %v181_v55 = vld [vmem:[%s7800_s11 + $0x38] sm:$0xff]  ;;  %v188_v56 = vld [vmem:[%s7800_s11 + $0x70] sm:$0xff]  ;;  %p7576_p12 = pnand %p7575_p11, %p7704_p5 }
  0x22   : > { %v7846_v53 = vpack.c.bf16 %v187_v51, %v186_v50  ;;  %v189_v57 = vld [vmem:[%s7800_s11 + $0x78] sm:$0xff]  ;;  %v7860_v58 = vpack.c.bf16 %v181_v55, %v180_v54  ;;  %v190_v36 = vld [vmem:[%s7800_s11 + $0x80] sm:$0xff]  ;;  %v191_v37 = vld [vmem:[%s7800_s11 + $0x88] sm:$0xff] }
  0x23   : > { %v7862_v59 = vpack.c.bf16 %v189_v57, %v188_v56  ;;  %v198_v38 = vld [vmem:[%s7800_s11 + $0xc0] sm:$0xff]  ;;  %v199_v40 = vld [vmem:[%s7800_s11 + $0xc8] sm:$0xff]  ;;  %v7908_v42 = vpack.c.bf16 %v191_v37, %v190_v36  ;;  %v192_v48 = vld [vmem:[%s7800_s11 + $0x90] sm:$0xff]  ;;  %p7577_p13 = pneg %p7576_p12 }
  0x24   : > { %6692 = vmatpush3.bf16.msra.mxu0 %v7755_v13  ;;  %v7910_v44 = vpack.c.bf16 %v199_v40, %v198_v38  ;;  %v193_v49 = vld [vmem:[%s7800_s11 + $0x98] sm:$0xff]  ;;  %v200_v50 = vld [vmem:[%s7800_s11 + $0xd0] sm:$0xff]  ;;  %v194_v56 = vld [vmem:[%s7800_s11 + $0xa0] sm:$0xff] }
  0x25   : > { %6693 = vmatprep.subr.bf16.mxu0 %v8999_v3  ;;  %9015 = vst [vmem:[#allocation5_spill] sm:$0xff] %v7862_v59  ;;  %v201_v51 = vld [vmem:[%s7800_s11 + $0xd8] sm:$0xff]  ;;  %v7930_v54 = vpack.c.bf16 %v193_v49, %v192_v48  ;;  %v195_v57 = vld [vmem:[%s7800_s11 + $0xa8] sm:$0xff]  ;;  %v202_v60 = vld [vmem:[%s7800_s11 + $0xe0] sm:$0xff] }
  0x26   : > { %v7932_v55 = vpack.c.bf16 %v201_v51, %v200_v50  ;;  %v203_v61 = vld [vmem:[%s7800_s11 + $0xe8] sm:$0xff]  ;;  %v7946_v62 = vpack.c.bf16 %v195_v57, %v194_v56  ;;  %v196_v0 = vld [vmem:[%s7800_s11 + $0xb0] sm:$0xff]  ;;  %v221_v48 = vld [vmem:[%s7800_s11 + $0x178] sm:$0xff] }
  0x27   : > { %v7948_v63 = vpack.c.bf16 %v203_v61, %v202_v60  ;;  %v219_v36 = vld [vmem:[%s7800_s11 + $0x168] sm:$0xff]  ;;  %v212_v40 = vld [vmem:[%s7800_s11 + $0x130] sm:$0xff]  ;;  %v222_v51 = vld [vmem:[%s7800_s11 + $0x180] sm:$0xff] }
  0x28   : > { %6695 = vmatpush3.bf16.msra.mxu0 %v7765_v16  ;;  %6706 = vmatpush3.bf16.xpose.msk.msra.mxu1 %vm7804_vm2, %v7828_v46  ;;  %v223_v56 = vld [vmem:[%s7800_s11 + $0x188] sm:$0xff]  ;;  %v230_v57 = vld [vmem:[%s7800_s11 + $0x1c0] sm:$0xff] }
  0x29   : > { %6696 = vmatprep.subr.bf16.mxu0 %v8999_v3  ;;  %6707 = vmatprep.subr.bf16.mxu1 %v8999_v3  ;;  %v231_v60 = vld [vmem:[%s7800_s11 + $0x1c8] sm:$0xff]  ;;  %v8048_v61 = vpack.c.bf16 %v223_v56, %v222_v51 }
  0x2c   : > { %6698 = vmatpush3.bf16.msra.mxu0 %v7775_v19 }
  0x2d   : > { %6715 = vmatprep.subr.bf16.mxu0 %v8999_v3 }
  0x2f   : > { %5713 = vmatmul.mubr.f32.vlgmr.msra.gmra.mrb[0].mxu0 %v9001_v6 }
  0x30   : > { %5750 = vmatprep.mubr.msk.f32.mxu0 %vm7639_vm0, %v9001_v6  ;;  %6710 = vmatpush3.bf16.xpose.msk.msra.mxu1 %vm7804_vm2, %v7844_v52 }
  0x31   : > { %6711 = vmatprep.subr.bf16.mxu1 %v8999_v3 }
  0x35   : > { %6718 = vmatpush3.bf16.xpose.msk.msra.mxu0 %vm7804_vm2, %v7814_v41 }
  0x36   : > { %6719 = vmatprep.subr.bf16.mxu0 %v8999_v3 }
  0x38   : > { %6714 = vmatpush3.bf16.xpose.msk.msra.mxu1 %vm7804_vm2, %v7860_v58 }
  0x39   : > { %6731 = vmatprep.subr.bf16.mxu1 %v8999_v3 }
  0x3d   : > { %6722 = vmatpush3.bf16.xpose.msk.msra.mxu0 %vm7804_vm2, %v7830_v47 }
  0x3e   : > { %6723 = vmatprep.subr.bf16.mxu0 %v8999_v3 }
  0x45   : > { %6726 = vmatpush3.bf16.xpose.msk.msra.mxu0 %vm7804_vm2, %v7846_v53 }
  0x46   : > { %6727 = vmatprep.subr.bf16.mxu0 %v8999_v3 }
  0x4d   : > { %6730 = vmatpush3.bf16.xpose.msk.msra.mxu0 %vm7804_vm2, %v7862_v59 }
  0x4e   : > { %6747 = vmatprep.subr.bf16.mxu0 %v8999_v3 }
 0x102   : > { %v327_v21 = vpop.f32.mrb[0].mxu0 }
 0x103   : > { %v328_v22 = vadd.f32 %v4966_v20, %v327_v21  ;;  %v5714_v23 = vpop.f32.mrb[1].mxu0 }
 0x105   : > { %7453 = vtanh.f32 %v328_v22  ;;  %v4967_v25 = vmul.f32 -1.442695, %v328_v22 }
 0x107   : > { %7455 = vpow2.f32 %v4967_v25 }
 0x10f   : > { %v7454_v24 = vpop.eup %7453 }
 0x110   : > { %340 = vrot.lane.b32.xlu0 %v7454_v24, %s7641_s5 }
 0x111   : > { %v7456_v26 = vpop.eup %7455 }
 0x112   : > { %v334_v27 = vadd.f32 1.0, %v7456_v26 }
 0x114   : > { %7457 = vrcp.f32 %v334_v27 }
 0x11e   : > { %v7787_v28 = vpop.eup %7457 }
 0x11f   : > { %v338_v31 = vmul.f32 0.0, %v7787_v28 }
 0x182   : > { %v341_v29 = vpop.permute.xlu0 %340 }
 0x183   : > { %v343_v30 = vmul.f32 %v7787_v28, %v341_v29 }
 0x185   : > { %345 = vrot.lane.b32.xlu0 %v343_v30, %s7642_s6 }
 0x1f7   : > { %v346_v32 = vpop.permute.xlu0 %345 }
 0x1f8   : > { %v7792_v33 = vadd.f32 %v346_v32, %v338_v31 }
 0x1fa   : > { %7459 = vtanh.f32 %v7792_v33 }
 0x204   : > { %v7460_v34 = vpop.eup %7459 }
 0x205   : > { %351 = vrot.lane.b32.xlu1 %v7460_v34, %s7641_s5 }
 0x277   : > { %v352_v2 = vpop.permute.xlu1 %351 }
 0x278   : > { %v7875_v5 = vmul.f32 %v7787_v28, %v352_v2  ;;  %v197_v2 = vld [vmem:[%s7800_s11 + $0xb8] sm:$0xff] }
 0x27a   : > { %v356_v8 = vcombine.high %v7875_v5, %v7875_v5  ;;  %v363_v9 = vrot.slane %v7875_v5, %v7872_v1 }
 0x27c   : > { %v379_v12 = vrot.slane %v363_v9, %v7872_v1  ;;  %v371_v14 = vcombine.high %v363_v9, %v363_v9  ;;  %v370_v15 = vrot.slane %v356_v8, %v7872_v1  ;;  %v204_v8 = vld [vmem:[%s7800_s11 + $0xf0] sm:$0xff]  ;;  %v205_v9 = vld [vmem:[%s7800_s11 + $0xf8] sm:$0xff] }
 0x27e   : > { %v408_v17 = vrot.slane %v379_v12, %v7881_v11  ;;  %v393_v18 = vrot.slane %v371_v14, %v7872_v1  ;;  %v401_v20 = vcombine.high %v379_v12, %v379_v12  ;;  %v372_v23 = vcombine.high %v370_v15, %v370_v15 }
 0x27f   : > { %v386_v25 = vrot.slane %v370_v15, %v7872_v1  ;;  %v7962_v12 = vpack.c.bf16 %v197_v2, %v196_v0  ;;  %v7964_v14 = vpack.c.bf16 %v205_v9, %v204_v8  ;;  %v206_v15 = vld [vmem:[%s7800_s11 + $0x100] sm:$0xff]  ;;  %v8050_v2 = vpack.c.bf16 %v231_v60, %v230_v57  ;;  %v224_v9 = vld [vmem:[%s7800_s11 + $0x190] sm:$0xff] }
 0x280   : > { %409 = vrot.lane.b32.xlu1 %v408_v17, %s7642_s6  ;;  %v511_v21 = vrot.slane %v393_v18, %v7881_v11  ;;  %v403_v22 = vcombine.high %v393_v18, %v393_v18  ;;  %v613_v24 = vrot.slane %v401_v20, %v7881_v11  ;;  %v400_v27 = vrot.slane %v372_v23, %v7872_v1  ;;  %v207_v17 = vld [vmem:[%s7800_s11 + $0x108] sm:$0xff]  ;;  %v214_v18 = vld [vmem:[%s7800_s11 + $0x140] sm:$0xff] }
 0x281   : > { %v817_v28 = vrot.slane %v386_v25, %v7881_v11  ;;  %v402_v29 = vcombine.high %v386_v25, %v386_v25  ;;  %v215_v20 = vld [vmem:[%s7800_s11 + $0x148] sm:$0xff]  ;;  %v208_v25 = vld [vmem:[%s7800_s11 + $0x110] sm:$0xff] }
 0x282   : > { %512 = vrot.lane.b32.xlu0 %v511_v21, %s7642_s6  ;;  %v715_v26 = vrot.slane %v403_v22, %v7881_v11  ;;  %v919_v30 = vrot.slane %v400_v27, %v7881_v11  ;;  %v404_v31 = vcombine.high %v400_v27, %v400_v27  ;;  %v7978_v21 = vpack.c.bf16 %v207_v17, %v206_v15  ;;  %v216_v27 = vld [vmem:[%s7800_s11 + $0x150] sm:$0xff]  ;;  %v225_v15 = vld [vmem:[%s7800_s11 + $0x198] sm:$0xff] }
 0x283   : > { %v1021_v32 = vrot.slane %v402_v29, %v7881_v11  ;;  %v7980_v23 = vpack.c.bf16 %v215_v20, %v214_v18  ;;  %v232_v17 = vld [vmem:[%s7800_s11 + $0x1d0] sm:$0xff]  ;;  %v233_v18 = vld [vmem:[%s7800_s11 + $0x1d8] sm:$0xff]  ;;  %v8070_v20 = vpack.c.bf16 %v225_v15, %v224_v9 }
 0x284   : > { %614 = vrot.lane.b32.xlu1 %v613_v24, %s7642_s6  ;;  %v1123_v34 = vrot.slane %v404_v31, %v7881_v11  ;;  %v210_v31 = vld [vmem:[%s7800_s11 + $0x120] sm:$0xff] }
 0x286   : > { %716 = vrot.lane.b32.xlu0 %v715_v26, %s7642_s6  ;;  %v209_v26 = vld [vmem:[%s7800_s11 + $0x118] sm:$0xff] }
 0x287   : > { %v8000_v29 = vpack.c.bf16 %v209_v26, %v208_v25  ;;  %v227_v25 = vld [vmem:[%s7800_s11 + $0x1a8] sm:$0xff]  ;;  %v234_v26 = vld [vmem:[%s7800_s11 + $0x1e0] sm:$0xff] }
 0x288   : > { %818 = vrot.lane.b32.xlu1 %v817_v28, %s7642_s6  ;;  %v217_v28 = vld [vmem:[%s7800_s11 + $0x158] sm:$0xff] }
 0x28a   : > { %920 = vrot.lane.b32.xlu0 %v919_v30, %s7642_s6  ;;  %v8002_v30 = vpack.c.bf16 %v217_v28, %v216_v27  ;;  %v235_v27 = vld [vmem:[%s7800_s11 + $0x1e8] sm:$0xff] }
 0x28c   : > { %1022 = vrot.lane.b32.xlu1 %v1021_v32, %s7642_s6  ;;  %v211_v32 = vld [vmem:[%s7800_s11 + $0x128] sm:$0xff] }
 0x28d   : > { %v8016_v37 = vpack.c.bf16 %v211_v32, %v210_v31  ;;  %v8088_v31 = vpack.c.bf16 %v235_v27, %v234_v26  ;;  %v228_v32 = vld [vmem:[%s7800_s11 + $0x1b0] sm:$0xff] }
 0x28e   : > { %1124 = vrot.lane.b32.xlu0 %v1123_v34, %s7642_s6  ;;  %v218_v34 = vld [vmem:[%s7800_s11 + $0x160] sm:$0xff] }
 0x28f   : > { %v8018_v38 = vpack.c.bf16 %v219_v36, %v218_v34  ;;  %v229_v34 = vld [vmem:[%s7800_s11 + $0x1b8] sm:$0xff]  ;;  %v236_v36 = vld [vmem:[%s7800_s11 + $0x1f0] sm:$0xff] }
 0x2f2   : > { %v410_v43 = vpop.permute.xlu1 %409 }
 0x2f3   : > { %5732 = vmatmul.mubr.msk.f32.vlgmr.msra.gmra.mrb[0].mxu1 %vm411_vm1, %v410_v43  ;;  %v213_v43 = vld [vmem:[%s7800_s11 + $0x138] sm:$0xff] }
 0x2f4   : > { %6734 = vmatpush3.bf16.xpose.msk.msra.mxu1 %vm7804_vm2, %v7908_v42  ;;  %v513_v45 = vpop.permute.xlu0 %512  ;;  %5769 = vmatprep.mubr.msk.f32.mxu1 %vm7639_vm0, %v9001_v6  ;;  %v8032_v49 = vpack.c.bf16 %v213_v43, %v212_v40  ;;  %v237_v40 = vld [vmem:[%s7800_s11 + $0x1f8] sm:$0xff]  ;;  %v8102_v43 = vpack.c.bf16 %v229_v34, %v228_v32 }
 0x2f5   : > { %5751 = vmatmul.mubr.msk.f32.vlgmr.msra.gmra.mrb[2].mxu0 %vm411_vm1, %v513_v45  ;;  %6735 = vmatprep.subr.bf16.mxu1 %v8999_v3  ;;  %v220_v45 = vld [vmem:[%s7800_s11 + $0x170] sm:$0xff] }
 0x2f6   : > { %6750 = vmatpush3.bf16.xpose.msk.msra.mxu0 %vm7804_vm2, %v7910_v44  ;;  %5788 = vmatprep.mubr.msk.f32.mxu0 %vm7639_vm0, %v9001_v6  ;;  %v615_v22 = vpop.permute.xlu1 %614  ;;  %v8034_v50 = vpack.c.bf16 %v221_v48, %v220_v45  ;;  %v8104_v45 = vpack.c.bf16 %v237_v40, %v236_v36 }
 0x2f7   : > { %6751 = vmatprep.subr.bf16.mxu0 %v8999_v3 }
 0x2f8   : > { %v717_v24 = vpop.permute.xlu0 %716 }
 0x2fa   : > { %v819_v0 = vpop.permute.xlu1 %818 }
 0x2fc   : > { %6738 = vmatpush3.bf16.xpose.msk.msra.mxu1 %vm7804_vm2, %v7930_v54  ;;  %v921_v8 = vpop.permute.xlu0 %920 }
 0x2fd   : > { %6739 = vmatprep.subr.bf16.mxu1 %v8999_v3 }
 0x2fe   : > { %6754 = vmatpush3.bf16.xpose.msk.msra.mxu0 %vm7804_vm2, %v7932_v55  ;;  %v1023_v48 = vpop.permute.xlu1 %1022 }
 0x2ff   : > { %6755 = vmatprep.subr.bf16.mxu0 %v8999_v3 }
 0x300   : > { %v1125_v51 = vpop.permute.xlu0 %1124 }
 0x304   : > { %6742 = vmatpush3.bf16.xpose.msk.msra.mxu1 %vm7804_vm2, %v7946_v62 }
 0x305   : > { %6743 = vmatprep.subr.bf16.mxu1 %v8999_v3 }
 0x306   : > { %6758 = vmatpush3.bf16.xpose.msk.msra.mxu0 %vm7804_vm2, %v7948_v63 }
 0x307   : > { %6759 = vmatprep.subr.bf16.mxu0 %v8999_v3 }
 0x30c   : > { %6746 = vmatpush3.bf16.xpose.msk.msra.mxu1 %vm7804_vm2, %v7962_v12 }
 0x30d   : > { %6763 = vmatprep.subr.bf16.mxu1 %v8999_v3 }
 0x30e   : > { %6762 = vmatpush3.bf16.xpose.msk.msra.mxu0 %vm7804_vm2, %v7964_v14 }
 0x30f   : > { %6779 = vmatprep.subr.bf16.mxu0 %v8999_v3 }
 0x313   : > { %5770 = vmatmul.mubr.msk.f32.vlgmr.msra.gmra.mrb[2].mxu1 %vm411_vm1, %v615_v22  ;;  %v8072_v22 = vpack.c.bf16 %v233_v18, %v232_v17 }
 0x314   : > { %6766 = vmatpush3.bf16.xpose.msk.msra.mxu1 %vm7804_vm2, %v7978_v21  ;;  %5807 = vmatprep.mubr.msk.f32.mxu1 %vm7639_vm0, %v9001_v6 }
 0x315   : > { %5789 = vmatmul.mubr.msk.f32.vlgmr.msra.gmra.mrb[4].mxu0 %vm411_vm1, %v717_v24  ;;  %6767 = vmatprep.subr.bf16.mxu1 %v8999_v3  ;;  %v226_v24 = vld [vmem:[%s7800_s11 + $0x1a0] sm:$0xff] }
 0x316   : > { %6782 = vmatpush3.bf16.xpose.msk.msra.mxu0 %vm7804_vm2, %v7980_v23  ;;  %5826 = vmatprep.mubr.msk.f32.mxu0 %vm7639_vm0, %v9001_v6  ;;  %v8086_v28 = vpack.c.bf16 %v227_v25, %v226_v24 }
 0x317   : > { %6783 = vmatprep.subr.bf16.mxu0 %v8999_v3 }
 0x31c   : > { %6770 = vmatpush3.bf16.xpose.msk.msra.mxu1 %vm7804_vm2, %v8000_v29 }
 0x31d   : > { %6771 = vmatprep.subr.bf16.mxu1 %v8999_v3 }
 0x31e   : > { %6786 = vmatpush3.bf16.xpose.msk.msra.mxu0 %vm7804_vm2, %v8002_v30 }
 0x31f   : > { %6787 = vmatprep.subr.bf16.mxu0 %v8999_v3 }
 0x324   : > { %6774 = vmatpush3.bf16.xpose.msk.msra.mxu1 %vm7804_vm2, %v8016_v37 }
 0x325   : > { %6775 = vmatprep.subr.bf16.mxu1 %v8999_v3 }
 0x326   : > { %6790 = vmatpush3.bf16.xpose.msk.msra.mxu0 %vm7804_vm2, %v8018_v38 }
 0x327   : > { %6791 = vmatprep.subr.bf16.mxu0 %v8999_v3 }
 0x32c   : > { %6778 = vmatpush3.bf16.xpose.msk.msra.mxu1 %vm7804_vm2, %v8032_v49 }
 0x32d   : > { %6795 = vmatprep.subr.bf16.mxu1 %v8999_v3 }
 0x32e   : > { %6794 = vmatpush3.bf16.xpose.msk.msra.mxu0 %vm7804_vm2, %v8034_v50 }
 0x32f   : > { %6811 = vmatprep.subr.bf16.mxu0 %v8999_v3 }
 0x333   : > { %5808 = vmatmul.mubr.msk.f32.vlgmr.msra.gmra.mrb[4].mxu1 %vm411_vm1, %v819_v0 }
 0x334   : > { %6798 = vmatpush3.bf16.xpose.msk.msra.mxu1 %vm7804_vm2, %v8048_v61  ;;  %5845 = vmatprep.mubr.msk.f32.mxu1 %vm7639_vm0, %v9001_v6 }
 0x335   : > { %5827 = vmatmul.mubr.msk.f32.vlgmr.msra.gmra.mrb[6].mxu0 %vm411_vm1, %v921_v8  ;;  %6799 = vmatprep.subr.bf16.mxu1 %v8999_v3 }
 0x336   : > { %6814 = vmatpush3.bf16.xpose.msk.msra.mxu0 %vm7804_vm2, %v8050_v2  ;;  %5864 = vmatprep.mubr.msk.f32.mxu0 %vm7639_vm0, %v9001_v6 }
 0x337   : > { %6815 = vmatprep.subr.bf16.mxu0 %v8999_v3 }
 0x33c   : > { %6802 = vmatpush3.bf16.xpose.msk.msra.mxu1 %vm7804_vm2, %v8070_v20 }
 0x33d   : > { %6803 = vmatprep.subr.bf16.mxu1 %v8999_v3 }
 0x33e   : > { %6818 = vmatpush3.bf16.xpose.msk.msra.mxu0 %vm7804_vm2, %v8072_v22 }
 0x33f   : > { %6819 = vmatprep.subr.bf16.mxu0 %v8999_v3 }
 0x344   : > { %6806 = vmatpush3.bf16.xpose.msk.msra.mxu1 %vm7804_vm2, %v8086_v28 }
 0x345   : > { %6807 = vmatprep.subr.bf16.mxu1 %v8999_v3 }
 0x346   : > { %6822 = vmatpush3.bf16.xpose.msk.msra.mxu0 %vm7804_vm2, %v8088_v31 }
 0x347   : > { %6823 = vmatprep.subr.bf16.mxu0 %v8999_v3 }
 0x34c   : > { %6810 = vmatpush3.bf16.xpose.msk.msra.mxu1 %vm7804_vm2, %v8102_v43 }
 0x34d   : > { %6827 = vmatprep.subr.bf16.mxu1 %v8999_v3 }
 0x34e   : > { %6826 = vmatpush3.bf16.xpose.msk.msra.mxu0 %vm7804_vm2, %v8104_v45 }
 0x34f   : > { %6851 = vmatprep.subr.bf16.mxu0 %v8999_v3 }
 0x353   : > { %5846 = vmatmul.mubr.msk.f32.vlgmr.msra.gmra.mrb[6].mxu1 %vm411_vm1, %v1023_v48 }
 0x354   : > { %6829 = vmatpush3.bf16.msra.mxu1 %v7811_v39  ;;  %5883 = vmatprep.mubr.msk.f32.mxu1 %vm7639_vm0, %v9001_v6 }
 0x355   : > { %5865 = vmatmul.mubr.msk.f32.vlgmr.msra.gmra.mrb[8].mxu0 %vm411_vm1, %v1125_v51  ;;  %6830 = vmatprep.subr.bf16.mxu1 %v8999_v3 }
 0x356   : > { %6853 = vmatpush3.bf16.msra.mxu0 %v7908_v42  ;;  %5921 = vmatprep.mubr.msk.f32.mxu0 %vm7639_vm0, %v9001_v6 }
 0x357   : > { %6854 = vmatprep.subr.bf16.mxu0 %v8999_v3 }
 0x358   : > { %6832 = vmatpush3.bf16.msra.mxu1 %v7828_v46 }
 0x359   : > { %6833 = vmatprep.subr.bf16.mxu1 %v8999_v3 }
 0x35a   : > { %6856 = vmatpush3.bf16.msra.mxu0 %v7930_v54 }
 0x35b   : > { %6857 = vmatprep.subr.bf16.mxu0 %v8999_v3 }
 0x35c   : > { %6835 = vmatpush3.bf16.msra.mxu1 %v7844_v52 }
 0x35d   : > { %6836 = vmatprep.subr.bf16.mxu1 %v8999_v3 }
 0x35e   : > { %6859 = vmatpush3.bf16.msra.mxu0 %v7946_v62 }
 0x35f   : > { %6860 = vmatprep.subr.bf16.mxu0 %v8999_v3 }
 0x360   : > { %6838 = vmatpush3.bf16.msra.mxu1 %v7860_v58 }
 0x361   : > { %6839 = vmatprep.subr.bf16.mxu1 %v8999_v3 }
 0x362   : > { %6862 = vmatpush3.bf16.msra.mxu0 %v7962_v12 }
 0x363   : > { %6875 = vmatprep.subr.bf16.mxu0 %v8999_v3 }
 0x3c6   : > { %v504_v56 = vpop.f32.mrb[0].mxu1 }
 0x3c7   : > { %v5733_v57 = vpop.f32.mrb[1].mxu1  ;;  %v1223_v60 = vsel %vm1222_vm3, %v504_v56, -inf }
 0x3c8   : > { %v606_v0 = vpop.f32.mrb[2].mxu0  ;;  %1224 = vmax.xlane.f32.xlu1 %v1223_v60 }
 0x3c9   : > { %v5752_v8 = vpop.f32.mrb[3].mxu0  ;;  %v1226_v9 = vsel %vm1222_vm3, %v606_v0, -inf }
 0x3ca   : > { %1227 = vmax.xlane.f32.xlu0 %v1226_v9 }
 0x3e6   : > { %v708_v15 = vpop.f32.mrb[2].mxu1 }
 0x3e7   : > { %v5771_v17 = vpop.f32.mrb[3].mxu1  ;;  %v1229_v18 = vsel %vm1222_vm3, %v708_v15, -inf }
 0x3e8   : > { %v810_v24 = vpop.f32.mrb[4].mxu0  ;;  %1230 = vmax.xlane.f32.xlu0 %v1229_v18 }
 0x3e9   : > { %v5790_v25 = vpop.f32.mrb[5].mxu0  ;;  %v1232_v26 = vsel %vm1222_vm3, %v810_v24, -inf }
 0x3ea   : > { %1233 = vmax.xlane.f32.xlu1 %v1232_v26 }
 0x406   : > { %v912_v27 = vpop.f32.mrb[4].mxu1 }
 0x407   : > { %v5809_v32 = vpop.f32.mrb[5].mxu1  ;;  %v1235_v34 = vsel %vm1222_vm3, %v912_v27, -inf }
 0x408   : > { %v1014_v36 = vpop.f32.mrb[6].mxu0  ;;  %1236 = vmax.xlane.f32.xlu0 %v1235_v34 }
 0x409   : > { %v5828_v40 = vpop.f32.mrb[7].mxu0  ;;  %v1238_v48 = vsel %vm1222_vm3, %v1014_v36, -inf }
 0x40a   : > { %1239 = vmax.xlane.f32.xlu1 %v1238_v48 }
 0x426   : > { %v1116_v51 = vpop.f32.mrb[6].mxu1 }
 0x427   : > { %v5847_v57 = vpop.f32.mrb[7].mxu1  ;;  %v1241_v60 = vsel %vm1222_vm3, %v1116_v51, -inf }
 0x428   : > { %v1218_v8 = vpop.f32.mrb[8].mxu0  ;;  %1242 = vmax.xlane.f32.xlu0 %v1241_v60 }
 0x429   : > { %v5866_v9 = vpop.f32.mrb[9].mxu0  ;;  %v1244_v17 = vsel %vm1222_vm3, %v1218_v8, -inf }
 0x42a   : > { %1245 = vmax.xlane.f32.xlu1 %v1244_v17 }
 0x455   : > { %v1225_v18 = vpop.xlane.xlu1 %1224 }
 0x456   : > { %v1247_v25 = vsub.f32 %v504_v56, %v1225_v18 }
 0x457   : > { %v1228_v26 = vpop.xlane.xlu0 %1227 }
 0x458   : > { %v1255_v32 = vmul.f32 1.442695, %v1247_v25  ;;  %v1248_v3 = vsub.f32 %v606_v0, %v1228_v26 }
 0x45a   : > { %7461 = vpow2.f32 %v1255_v32  ;;  %v1257_v34 = vmul.f32 1.442695, %v1248_v3 }
 0x45c   : > { %7463 = vpow2.f32 %v1257_v34 }
 0x464   : > { %v7462_v40 = vpop.eup %7461 }
 0x465   : > { %v1271_v48 = vsel %vm1222_vm3, %v7462_v40, 0.0 }
 0x466   : > { %v8145_v57 = vpop.eup %7463  ;;  %1272 = vadd.xlane.f32.xlu0 %v1271_v48 }
 0x467   : > { %v1274_v60 = vsel %vm1222_vm3, %v8145_v57, 0.0 }
 0x468   : > { %1275 = vadd.xlane.f32.xlu1 %v1274_v60 }
 0x475   : > { %v1231_v9 = vpop.xlane.xlu0 %1230 }
 0x476   : > { %v1249_v17 = vsub.f32 %v708_v15, %v1231_v9 }
 0x477   : > { %v1234_v6 = vpop.xlane.xlu1 %1233 }
 0x478   : > { %v1259_v56 = vmul.f32 1.442695, %v1249_v17  ;;  %v1250_v18 = vsub.f32 %v810_v24, %v1234_v6 }
 0x47a   : > { %7465 = vpow2.f32 %v1259_v56  ;;  %v1261_v0 = vmul.f32 1.442695, %v1250_v18 }
 0x47c   : > { %7467 = vpow2.f32 %v1261_v0 }
 0x484   : > { %v8149_v3 = vpop.eup %7465 }
 0x485   : > { %v1277_v25 = vsel %vm1222_vm3, %v8149_v3, 0.0 }
 0x486   : > { %v8153_v26 = vpop.eup %7467  ;;  %1278 = vadd.xlane.f32.xlu0 %v1277_v25 }
 0x487   : > { %v1280_v32 = vsel %vm1222_vm3, %v8153_v26, 0.0 }
 0x488   : > { %1281 = vadd.xlane.f32.xlu1 %v1280_v32 }
 0x495   : > { %v1237_v34 = vpop.xlane.xlu0 %1236 }
 0x496   : > { %v1251_v15 = vsub.f32 %v912_v27, %v1237_v34 }
 0x497   : > { %v1240_v48 = vpop.xlane.xlu1 %1239 }
 0x498   : > { %v1263_v60 = vmul.f32 1.442695, %v1251_v15  ;;  %v1252_v6 = vsub.f32 %v1014_v36, %v1240_v48 }
 0x49a   : > { %7469 = vpow2.f32 %v1263_v60  ;;  %v1265_v24 = vmul.f32 1.442695, %v1252_v6 }
 0x49c   : > { %7471 = vpow2.f32 %v1265_v24 }
 0x4a4   : > { %v8157_v9 = vpop.eup %7469 }
 0x4a5   : > { %v1283_v17 = vsel %vm1222_vm3, %v8157_v9, 0.0 }
 0x4a6   : > { %v8161_v56 = vpop.eup %7471  ;;  %1284 = vadd.xlane.f32.xlu0 %v1283_v17 }
 0x4a7   : > { %v1286_v18 = vsel %vm1222_vm3, %v8161_v56, 0.0 }
 0x4a8   : > { %1287 = vadd.xlane.f32.xlu1 %v1286_v18  ;;  %v9018_v18 = vmov 0.0  }
 0x4b5   : > { %v1243_v0 = vpop.xlane.xlu0 %1242 }
 0x4b6   : > { %v1253_v27 = vsub.f32 %v1116_v51, %v1243_v0  ;;  %v9019_v0 = vmov 0.0|0.0  }
 0x4b7   : > { %v1246_v25 = vpop.xlane.xlu1 %1245 }
 0x4b8   : > { %v1267_v32 = vmul.f32 1.442695, %v1253_v27  ;;  %v1254_v36 = vsub.f32 %v1218_v8, %v1246_v25 }
 0x4ba   : > { %7473 = vpow2.f32 %v1267_v32  ;;  %v1269_v34 = vmul.f32 1.442695, %v1254_v36 }
 0x4bc   : > { %7475 = vpow2.f32 %v1269_v34 }
 0x4c4   : > { %v8165_v15 = vpop.eup %7473 }
 0x4c5   : > { %v1289_v48 = vsel %vm1222_vm3, %v8165_v15, 0.0 }
 0x4c6   : > { %v8169_v60 = vpop.eup %7475  ;;  %1290 = vadd.xlane.f32.xlu0 %v1289_v48 }
 0x4c7   : > { %v1292_v6 = vsel %vm1222_vm3, %v8169_v60, 0.0 }
 0x4c8   : > { %1293 = vadd.xlane.f32.xlu1 %v1292_v6 }
 0x4dc   : > { %1896 = vrot.lane.b32.xlu0 %v7875_v5, %s7642_s6 }
 0x4f3   : > { %v1273_v51 = vpop.xlane.xlu0 %1272 }
 0x4f4   : > { %7477 = vrcp.f32 %v1273_v51 }
 0x4f5   : > { %v1276_v17 = vpop.xlane.xlu1 %1275 }
 0x4f6   : > { %7479 = vrcp.f32 %v1276_v17 }
 0x4fe   : > { %v7478_v8 = vpop.eup %7477 }
 0x4ff   : > { %v1296_v24 = vmul.f32 %v7478_v8, %v7462_v40 }
 0x500   : > { %v7480_v40 = vpop.eup %7479 }
 0x501   : > { %5884 = vmatmul.mubr.msk.f32.vlgmr.msra.gmra.mrb[8].mxu1 %vm1311_vm4, %v1296_v24  ;;  %v1298_v27 = vmul.f32 %v7480_v40, %v8145_v57 }
 0x502   : > { %6841 = vmatpush3.bf16.msra.mxu1 %v7814_v41  ;;  %5902 = vmatprep.mubr.msk.f32.mxu1 %vm7639_vm0, %v9018_v18 }
 0x503   : > { %6842 = vmatprep.subr.bf16.mxu1 %v9019_v0 }
 0x506   : > { %6844 = vmatpush3.bf16.msra.mxu1 %v7830_v47 }
 0x507   : > { %6845 = vmatprep.subr.bf16.mxu1 %v9019_v0 }
 0x50a   : > { %6847 = vmatpush3.bf16.msra.mxu1 %v7846_v53 }
 0x50b   : > { %6848 = vmatprep.subr.bf16.mxu1 %v9019_v0 }
 0x50e   : > { %6850 = vmatpush3.bf16.msra.mxu1 %v7862_v59 }
 0x50f   : > { %6863 = vmatprep.subr.bf16.mxu1 %v9019_v0 }
 0x511   : > { %5903 = vmatmul.mubr.msk.f32.vlgmr.msra.gmra.mrb[10].mxu1 %vm1311_vm4, %v1298_v27 }
 0x512   : > { %6865 = vmatpush3.bf16.msra.mxu1 %v7910_v44  ;;  %5940 = vmatprep.mubr.msk.f32.mxu1 %vm7639_vm0, %v9018_v18 }
 0x513   : > { %v1279_v25 = vpop.xlane.xlu0 %1278  ;;  %6866 = vmatprep.subr.bf16.mxu1 %v9019_v0 }
 0x514   : > { %7481 = vrcp.f32 %v1279_v25 }
 0x515   : > { %v1282_v32 = vpop.xlane.xlu1 %1281 }
 0x516   : > { %7483 = vrcp.f32 %v1282_v32  ;;  %6868 = vmatpush3.bf16.msra.mxu1 %v7932_v55 }
 0x517   : > { %6869 = vmatprep.subr.bf16.mxu1 %v9019_v0 }
 0x51a   : > { %6871 = vmatpush3.bf16.msra.mxu1 %v7948_v63 }
 0x51b   : > { %6872 = vmatprep.subr.bf16.mxu1 %v9019_v0 }
 0x51e   : > { %v7482_v57 = vpop.eup %7481  ;;  %6874 = vmatpush3.bf16.msra.mxu1 %v7964_v14 }
 0x51f   : > { %v1300_v36 = vmul.f32 %v7482_v57, %v8149_v3  ;;  %6887 = vmatprep.subr.bf16.mxu1 %v9019_v0 }
 0x520   : > { %v7484_v34 = vpop.eup %7483 }
 0x521   : > { %v1302_v48 = vmul.f32 %v7484_v34, %v8153_v26  ;;  %5922 = vmatmul.mubr.msk.f32.vlgmr.msra.gmra.mrb[10].mxu0 %vm1311_vm4, %v1300_v36 }
 0x522   : > { %6877 = vmatpush3.bf16.msra.mxu0 %v7978_v21  ;;  %5959 = vmatprep.mubr.msk.f32.mxu0 %vm7639_vm0, %v9018_v18 }
 0x523   : > { %5941 = vmatmul.mubr.msk.f32.vlgmr.msra.gmra.mrb[12].mxu1 %vm1311_vm4, %v1302_v48  ;;  %6878 = vmatprep.subr.bf16.mxu0 %v9019_v0 }
 0x524   : > { %6889 = vmatpush3.bf16.msra.mxu1 %v7980_v23  ;;  %5978 = vmatprep.mubr.msk.f32.mxu1 %vm7639_vm0, %v9018_v18 }
 0x525   : > { %6890 = vmatprep.subr.bf16.mxu1 %v9019_v0 }
 0x526   : > { %6880 = vmatpush3.bf16.msra.mxu0 %v8000_v29 }
 0x527   : > { %6881 = vmatprep.subr.bf16.mxu0 %v9019_v0 }
 0x528   : > { %6892 = vmatpush3.bf16.msra.mxu1 %v8002_v30 }
 0x529   : > { %6893 = vmatprep.subr.bf16.mxu1 %v9019_v0 }
 0x52a   : > { %6883 = vmatpush3.bf16.msra.mxu0 %v8016_v37 }
 0x52b   : > { %6884 = vmatprep.subr.bf16.mxu0 %v9019_v0 }
 0x52c   : > { %6895 = vmatpush3.bf16.msra.mxu1 %v8018_v38 }
 0x52d   : > { %6896 = vmatprep.subr.bf16.mxu1 %v9019_v0 }
 0x52e   : > { %6886 = vmatpush3.bf16.msra.mxu0 %v8032_v49 }
 0x52f   : > { %6899 = vmatprep.subr.bf16.mxu0 %v9019_v0 }
 0x530   : > { %6898 = vmatpush3.bf16.msra.mxu1 %v8034_v50 }
 0x531   : > { %6911 = vmatprep.subr.bf16.mxu1 %v9019_v0 }
 0x533   : > { %v1285_v3 = vpop.xlane.xlu0 %1284 }
 0x534   : > { %7485 = vrcp.f32 %v1285_v3 }
 0x535   : > { %v1288_v26 = vpop.xlane.xlu1 %1287 }
 0x536   : > { %7487 = vrcp.f32 %v1288_v26 }
 0x53e   : > { %v7486_v6 = vpop.eup %7485 }
 0x53f   : > { %v1304_v51 = vmul.f32 %v7486_v6, %v8157_v9 }
 0x540   : > { %v7488_v8 = vpop.eup %7487 }
 0x541   : > { %v1306_v24 = vmul.f32 %v7488_v8, %v8161_v56  ;;  %5960 = vmatmul.mubr.msk.f32.vlgmr.msra.gmra.mrb[12].mxu0 %vm1311_vm4, %v1304_v51 }
 0x542   : > { %6901 = vmatpush3.bf16.msra.mxu0 %v8048_v61  ;;  %5997 = vmatprep.mubr.msk.f32.mxu0 %vm7639_vm0, %v9018_v18 }
 0x543   : > { %5979 = vmatmul.mubr.msk.f32.vlgmr.msra.gmra.mrb[14].mxu1 %vm1311_vm4, %v1306_v24  ;;  %6902 = vmatprep.subr.bf16.mxu0 %v9019_v0 }
 0x544   : > { %6913 = vmatpush3.bf16.msra.mxu1 %v8050_v2  ;;  %6016 = vmatprep.mubr.msk.f32.mxu1 %vm7639_vm0, %v9018_v18 }
 0x545   : > { %6914 = vmatprep.subr.bf16.mxu1 %v9019_v0 }
 0x546   : > { %6904 = vmatpush3.bf16.msra.mxu0 %v8070_v20 }
 0x547   : > { %6905 = vmatprep.subr.bf16.mxu0 %v9019_v0 }
 0x548   : > { %6916 = vmatpush3.bf16.msra.mxu1 %v8072_v22 }
 0x549   : > { %6917 = vmatprep.subr.bf16.mxu1 %v9019_v0 }
 0x54a   : > { %6907 = vmatpush3.bf16.msra.mxu0 %v8086_v28 }
 0x54b   : > { %6908 = vmatprep.subr.bf16.mxu0 %v9019_v0 }
 0x54c   : > { %6919 = vmatpush3.bf16.msra.mxu1 %v8088_v31 }
 0x54d   : > { %6920 = vmatprep.subr.bf16.mxu1 %v9019_v0 }
 0x54e   : > { %6910 = vmatpush3.bf16.msra.mxu0 %v8102_v43 }
 0x54f   : > { %6923 = vmatprep.subr.bf16.mxu0 %v9019_v0 }
 0x550   : > { %6922 = vmatpush3.bf16.msra.mxu1 %v8104_v45 }
 0x551   : > { %6941 = vmatprep.subr.bf16.mxu1 %v9019_v0 }
 0x553   : > { %v1291_v9 = vpop.xlane.xlu0 %1290 }
 0x554   : > { %7489 = vrcp.f32 %v1291_v9 }
 0x555   : > { %v1294_v56 = vpop.xlane.xlu1 %1293 }
 0x556   : > { %7491 = vrcp.f32 %v1294_v56 }
 0x55e   : > { %v7490_v17 = vpop.eup %7489 }
 0x55f   : > { %v1308_v40 = vmul.f32 %v7490_v17, %v8165_v15 }
 0x560   : > { %v7492_v27 = vpop.eup %7491 }
 0x561   : > { %v1310_v25 = vmul.f32 %v7492_v27, %v8169_v60  ;;  %5998 = vmatmul.mubr.msk.f32.vlgmr.msra.gmra.mrb[14].mxu0 %vm1311_vm4, %v1308_v40 }
 0x562   : > { %6925 = vmatpush3.bf16.msra.mxu0 %v7724_v4  ;;  %6043 = vmatprep.mubr.msk.f32.mxu0 %vm7639_vm0, %v9018_v18 }
 0x563   : > { %6017 = vmatmul.mubr.msk.f32.vlgmr.msra.gmra.mrb[16].mxu1 %vm1311_vm4, %v1310_v25  ;;  %6926 = vmatprep.subr.bf16.mxu0 %v9019_v0 }
 0x564   : > { %6944 = vmatpush3.bf16.xpose.msk.msra.mxu1 %vm7804_vm2, %v7811_v39  ;;  %6062 = vmatprep.mubr.msk.f32.mxu1 %vm7639_vm0, %v9018_v18 }
 0x565   : > { %6945 = vmatprep.subr.bf16.mxu1 %v9019_v0 }
 0x566   : > { %6928 = vmatpush3.bf16.msra.mxu0 %v7735_v7 }
 0x567   : > { %6929 = vmatprep.subr.bf16.mxu0 %v9019_v0 }
 0x56a   : > { %6931 = vmatpush3.bf16.msra.mxu0 %v7745_v10 }
 0x56b   : > { %6932 = vmatprep.subr.bf16.mxu0 %v9019_v0 }
 0x56c   : > { %6948 = vmatpush3.bf16.xpose.msk.msra.mxu1 %vm7804_vm2, %v7828_v46 }
 0x56d   : > { %6949 = vmatprep.subr.bf16.mxu1 %v9019_v0 }
 0x56e   : > { %6934 = vmatpush3.bf16.msra.mxu0 %v7755_v13 }
 0x56f   : > { %6935 = vmatprep.subr.bf16.mxu0 %v9019_v0 }
 0x572   : > { %6937 = vmatpush3.bf16.msra.mxu0 %v7765_v16 }
 0x573   : > { %6938 = vmatprep.subr.bf16.mxu0 %v9019_v0 }
 0x574   : > { %6952 = vmatpush3.bf16.xpose.msk.msra.mxu1 %vm7804_vm2, %v7844_v52 }
 0x575   : > { %6953 = vmatprep.subr.bf16.mxu1 %v9019_v0 }
 0x576   : > { %6940 = vmatpush3.bf16.msra.mxu0 %v7775_v19 }
 0x577   : > { %6957 = vmatprep.subr.bf16.mxu0 %v9019_v0 }
 0x57c   : > { %6956 = vmatpush3.bf16.xpose.msk.msra.mxu1 %vm7804_vm2, %v7860_v58 }
 0x57d   : > { %6973 = vmatprep.subr.bf16.mxu1 %v9019_v0 }
 0x5d4   : > { %v1381_v15 = vpop.f32.mrb[8].mxu1 }
 0x5d5   : > { %v5885_v60 = vpop.f32.mrb[9].mxu1 }
 0x5e4   : > { %v1454_v32 = vpop.f32.mrb[10].mxu1 }
 0x5e5   : > { %v1907_v57 = vrot.slane %v1454_v32, 7  ;;  %v5904_v36 = vpop.f32.mrb[11].mxu1 }
 0x5e7   : > { %v1909_v34 = vsel %vm1908_vm5, %v1907_v57, %v1381_v15 }
 0x5f4   : > { %v1527_v48 = vpop.f32.mrb[10].mxu0 }
 0x5f5   : > { %v1910_v3 = vrot.slane %v1527_v48, 6  ;;  %v5923_v26 = vpop.f32.mrb[11].mxu0 }
 0x5f6   : > { %v1600_v6 = vpop.f32.mrb[12].mxu1 }
 0x5f7   : > { %v1912_v51 = vsel %vm1911_vm6, %v1910_v3, %v1909_v34  ;;  %v1913_v8 = vrot.slane %v1600_v6, 5  ;;  %v5942_v24 = vpop.f32.mrb[13].mxu1 }
 0x5f8   : > { %v1897_v24 = vpop.permute.xlu0 %1896 }
 0x5f9   : > { %v1915_v9 = vsel %vm1914_vm7, %v1913_v8, %v1912_v51 }
 0x614   : > { %v1673_v56 = vpop.f32.mrb[12].mxu0 }
 0x615   : > { %v1916_v17 = vrot.slane %v1673_v56, 4  ;;  %v5961_v40 = vpop.f32.mrb[13].mxu0 }
 0x616   : > { %v1746_v27 = vpop.f32.mrb[14].mxu1  ;;  %v8316_v40 = vld [vmem:[%s8997_s2] ss:$0 sm:$0xff] }
 0x617   : > { %v1918_v25 = vsel %vm1917_vm8, %v1916_v17, %v1915_v9  ;;  %v1919_v15 = vrot.slane %v1746_v27, 3  ;;  %v5980_v60 = vpop.f32.mrb[15].mxu1  ;;  %9020 = vst [vmem:[#allocation8_spill] sm:$0xff] %v8316_v40 }
 0x619   : > { %v1921_v32 = vsel %vm1920_vm9, %v1919_v15, %v1918_v25 }
 0x634   : > { %v1819_v57 = vpop.f32.mrb[14].mxu0 }
 0x635   : > { %v1922_v36 = vrot.slane %v1819_v57, 2  ;;  %v5999_v34 = vpop.f32.mrb[15].mxu0 }
 0x636   : > { %v1892_v48 = vpop.f32.mrb[16].mxu1 }
 0x637   : > { %v1925_v3 = vrot.slane %v1892_v48, 1  ;;  %v6018_v26 = vpop.f32.mrb[17].mxu1  ;;  %v1924_v6 = vsel %vm1923_vm10, %v1922_v36, %v1921_v32 }
 0x639   : > { %v1927_v51 = vsel %vm1926_vm11, %v1925_v3, %v1924_v6 }
 0x63a   : > { %1928 = vrot.lane.b32.xlu1 %v1927_v51, %s7642_s6 }
 0x63e   : > { %1931 = vrot.lane.b32.xlu1 %v7875_v5, %s7644_s17 }
 0x6ac   : > { %v1929_v8 = vpop.permute.xlu1 %1928 }
 0x6ad   : > { %v1934_v9 = vsel %vm411_vm1, %v1897_v24, %v1929_v8 }
 0x6b0   : > { %v1932_v56 = vpop.permute.xlu1 %1931 }
 0x6b1   : > { %v1935_v17 = vsel %vm1311_vm4, %v1934_v9, %v1932_v56 }
 0x6b2   : > { %6044 = vmatmul.mubr.msk.f32.vlgmr.msra.gmra.mrb[16].mxu0 %vm257_vm12, %v1935_v17 }
 0x6b3   : > { %6960 = vmatpush3.bf16.xpose.msk.msra.mxu0 %vm7804_vm2, %v7814_v41  ;;  %6081 = vmatprep.mubr.msk.f32.mxu0 %vm7639_vm0, %v9018_v18 }
 0x6b4   : > { %6961 = vmatprep.subr.bf16.mxu0 %v9019_v0 }
 0x6bb   : > { %6964 = vmatpush3.bf16.xpose.msk.msra.mxu0 %vm7804_vm2, %v7830_v47 }
 0x6bc   : > { %6965 = vmatprep.subr.bf16.mxu0 %v9019_v0 }
 0x6c3   : > { %6968 = vmatpush3.bf16.xpose.msk.msra.mxu0 %vm7804_vm2, %v7846_v53 }
 0x6c4   : > { %6969 = vmatprep.subr.bf16.mxu0 %v9019_v0 }
 0x6cb   : > { %6972 = vmatpush3.bf16.xpose.msk.msra.mxu0 %vm7804_vm2, %v7862_v59 }
 0x6cc   : > { %6989 = vmatprep.subr.bf16.mxu0 %v9019_v0 }
 0x785   : > { %v2005_v5 = vpop.f32.mrb[16].mxu0 }
 0x786   : > { %v2006_v27 = vadd.f32 %v8316_v40, %v2005_v5  ;;  %v6045_v25 = vpop.f32.mrb[17].mxu0 }
 0x788   : > { %7493 = vtanh.f32 %v2006_v27  ;;  %v5049_v60 = vmul.f32 -1.442695, %v2006_v27 }
 0x78a   : > { %7495 = vpow2.f32 %v5049_v60 }
 0x792   : > { %v7494_v15 = vpop.eup %7493 }
 0x793   : > { %2018 = vrot.lane.b32.xlu0 %v7494_v15, %s7641_s5 }
 0x794   : > { %v7496_v32 = vpop.eup %7495 }
 0x795   : > { %v2012_v57 = vadd.f32 1.0, %v7496_v32 }
 0x797   : > { %7497 = vrcp.f32 %v2012_v57 }
 0x7a1   : > { %v7498_v36 = vpop.eup %7497 }
 0x7a2   : > { %v2016_v3 = vmul.f32 %v7498_v36, %v7792_v33 }
 0x805   : > { %v2019_v34 = vpop.permute.xlu0 %2018 }
 0x806   : > { %v2021_v48 = vmul.f32 %v7498_v36, %v2019_v34 }
 0x808   : > { %2023 = vrot.lane.b32.xlu1 %v2021_v48, %s7642_s6 }
 0x87a   : > { %v2024_v26 = vpop.permute.xlu1 %2023 }
 0x87b   : > { %v8322_v6 = vadd.f32 %v2024_v26, %v2016_v3 }
 0x87d   : > { %9021 = vst [vmem:[#allocation9_spill] sm:$0xff] %v8322_v6  ;;  %7499 = vtanh.f32 %v8322_v6 }
 0x887   : > { %v7500_v51 = vpop.eup %7499 }
 0x888   : > { %2029 = vrot.lane.b32.xlu0 %v7500_v51, %s7641_s5 }
 0x8fa   : > { %v2030_v8 = vpop.permute.xlu0 %2029 }
 0x8fb   : > { %v8326_v24 = vmul.f32 %v7498_v36, %v2030_v8 }
 0x8fd   : > { %v2034_v9 = vcombine.high %v8326_v24, %v8326_v24  ;;  %v2041_v56 = vrot.slane %v8326_v24, %v7872_v1 }
 0x8ff   : > { %v2057_v17 = vrot.slane %v2041_v56, %v7872_v1  ;;  %v2049_v33 = vcombine.high %v2041_v56, %v2041_v56  ;;  %v2048_v5 = vrot.slane %v2034_v9, %v7872_v1 }
 0x901   : > { %v2086_v27 = vrot.slane %v2057_v17, %v7881_v11  ;;  %v2071_v25 = vrot.slane %v2049_v33, %v7872_v1  ;;  %v2079_v15 = vcombine.high %v2057_v17, %v2057_v17  ;;  %v2050_v57 = vcombine.high %v2048_v5, %v2048_v5 }
 0x902   : > { %v2064_v34 = vrot.slane %v2048_v5, %v7872_v1 }
 0x903   : > { %2087 = vrot.lane.b32.xlu1 %v2086_v27, %s7642_s6  ;;  %v2164_v60 = vrot.slane %v2071_v25, %v7881_v11  ;;  %v2081_v32 = vcombine.high %v2071_v25, %v2071_v25  ;;  %v2242_v36 = vrot.slane %v2079_v15, %v7881_v11  ;;  %v2078_v3 = vrot.slane %v2050_v57, %v7872_v1 }
 0x904   : > { %v2398_v26 = vrot.slane %v2064_v34, %v7881_v11  ;;  %v2080_v51 = vcombine.high %v2064_v34, %v2064_v34 }
 0x905   : > { %2165 = vrot.lane.b32.xlu0 %v2164_v60, %s7642_s6  ;;  %v2320_v48 = vrot.slane %v2081_v32, %v7881_v11  ;;  %v2476_v8 = vrot.slane %v2078_v3, %v7881_v11  ;;  %v2082_v9 = vcombine.high %v2078_v3, %v2078_v3 }
 0x906   : > { %v2554_v56 = vrot.slane %v2080_v51, %v7881_v11 }
 0x907   : > { %2243 = vrot.lane.b32.xlu1 %v2242_v36, %s7642_s6  ;;  %v2632_v17 = vrot.slane %v2082_v9, %v7881_v11 }
 0x909   : > { %2321 = vrot.lane.b32.xlu0 %v2320_v48, %s7642_s6 }
 0x90b   : > { %2399 = vrot.lane.b32.xlu1 %v2398_v26, %s7642_s6 }
 0x90d   : > { %2477 = vrot.lane.b32.xlu0 %v2476_v8, %s7642_s6 }
 0x90f   : > { %2555 = vrot.lane.b32.xlu1 %v2554_v56, %s7642_s6 }
 0x911   : > { %2633 = vrot.lane.b32.xlu0 %v2632_v17, %s7642_s6 }
 0x975   : > { %v2088_v33 = vpop.permute.xlu1 %2087 }
 0x976   : > { %6063 = vmatmul.mubr.msk.f32.vlgmr.msra.gmra.mrb[18].mxu1 %vm411_vm1, %v2088_v33 }
 0x977   : > { %6976 = vmatpush3.bf16.xpose.msk.msra.mxu1 %vm7804_vm2, %v7908_v42  ;;  %v2166_v5 = vpop.permute.xlu0 %2165  ;;  %6100 = vmatprep.mubr.msk.f32.mxu1 %vm7639_vm0, %v9018_v18 }
 0x978   : > { %6082 = vmatmul.mubr.msk.f32.vlgmr.msra.gmra.mrb[18].mxu0 %vm411_vm1, %v2166_v5  ;;  %6977 = vmatprep.subr.bf16.mxu1 %v9019_v0 }
 0x979   : > { %6992 = vmatpush3.bf16.xpose.msk.msra.mxu0 %vm7804_vm2, %v7910_v44  ;;  %6119 = vmatprep.mubr.msk.f32.mxu0 %vm7639_vm0, %v9018_v18  ;;  %v2244_v27 = vpop.permute.xlu1 %2243 }
 0x97a   : > { %6993 = vmatprep.subr.bf16.mxu0 %v9019_v0 }
 0x97b   : > { %v2322_v25 = vpop.permute.xlu0 %2321 }
 0x97d   : > { %v2400_v15 = vpop.permute.xlu1 %2399 }
 0x97f   : > { %6980 = vmatpush3.bf16.xpose.msk.msra.mxu1 %vm7804_vm2, %v7930_v54  ;;  %v2478_v60 = vpop.permute.xlu0 %2477 }
 0x980   : > { %6981 = vmatprep.subr.bf16.mxu1 %v9019_v0 }
 0x981   : > { %6996 = vmatpush3.bf16.xpose.msk.msra.mxu0 %vm7804_vm2, %v7932_v55  ;;  %v2556_v32 = vpop.permute.xlu1 %2555 }
 0x982   : > { %6997 = vmatprep.subr.bf16.mxu0 %v9019_v0 }
 0x983   : > { %v2634_v57 = vpop.permute.xlu0 %2633 }
 0x987   : > { %6984 = vmatpush3.bf16.xpose.msk.msra.mxu1 %vm7804_vm2, %v7946_v62 }
 0x988   : > { %6985 = vmatprep.subr.bf16.mxu1 %v9019_v0 }
 0x989   : > { %7000 = vmatpush3.bf16.xpose.msk.msra.mxu0 %vm7804_vm2, %v7948_v63 }
 0x98a   : > { %7001 = vmatprep.subr.bf16.mxu0 %v9019_v0 }
 0x98f   : > { %6988 = vmatpush3.bf16.xpose.msk.msra.mxu1 %vm7804_vm2, %v7962_v12 }
 0x990   : > { %7005 = vmatprep.subr.bf16.mxu1 %v9019_v0 }
 0x991   : > { %7004 = vmatpush3.bf16.xpose.msk.msra.mxu0 %vm7804_vm2, %v7964_v14 }
 0x992   : > { %7021 = vmatprep.subr.bf16.mxu0 %v9019_v0 }
 0x996   : > { %6101 = vmatmul.mubr.msk.f32.vlgmr.msra.gmra.mrb[20].mxu1 %vm411_vm1, %v2244_v27 }
 0x997   : > { %7008 = vmatpush3.bf16.xpose.msk.msra.mxu1 %vm7804_vm2, %v7978_v21  ;;  %6138 = vmatprep.mubr.msk.f32.mxu1 %vm7639_vm0, %v9018_v18 }
 0x998   : > { %6120 = vmatmul.mubr.msk.f32.vlgmr.msra.gmra.mrb[20].mxu0 %vm411_vm1, %v2322_v25  ;;  %7009 = vmatprep.subr.bf16.mxu1 %v9019_v0 }
 0x999   : > { %7024 = vmatpush3.bf16.xpose.msk.msra.mxu0 %vm7804_vm2, %v7980_v23  ;;  %6157 = vmatprep.mubr.msk.f32.mxu0 %vm7639_vm0, %v9018_v18 }
 0x99a   : > { %7025 = vmatprep.subr.bf16.mxu0 %v9019_v0 }
 0x99f   : > { %7012 = vmatpush3.bf16.xpose.msk.msra.mxu1 %vm7804_vm2, %v8000_v29 }
 0x9a0   : > { %7013 = vmatprep.subr.bf16.mxu1 %v9019_v0 }
 0x9a1   : > { %7028 = vmatpush3.bf16.xpose.msk.msra.mxu0 %vm7804_vm2, %v8002_v30 }
 0x9a2   : > { %7029 = vmatprep.subr.bf16.mxu0 %v9019_v0 }
 0x9a7   : > { %7016 = vmatpush3.bf16.xpose.msk.msra.mxu1 %vm7804_vm2, %v8016_v37 }
 0x9a8   : > { %7017 = vmatprep.subr.bf16.mxu1 %v9019_v0 }
 0x9a9   : > { %7032 = vmatpush3.bf16.xpose.msk.msra.mxu0 %vm7804_vm2, %v8018_v38 }
 0x9aa   : > { %7033 = vmatprep.subr.bf16.mxu0 %v9019_v0 }
 0x9af   : > { %7020 = vmatpush3.bf16.xpose.msk.msra.mxu1 %vm7804_vm2, %v8032_v49 }
 0x9b0   : > { %7037 = vmatprep.subr.bf16.mxu1 %v9019_v0 }
 0x9b1   : > { %7036 = vmatpush3.bf16.xpose.msk.msra.mxu0 %vm7804_vm2, %v8034_v50 }
 0x9b2   : > { %7053 = vmatprep.subr.bf16.mxu0 %v9019_v0 }
 0x9b6   : > { %6139 = vmatmul.mubr.msk.f32.vlgmr.msra.gmra.mrb[22].mxu1 %vm411_vm1, %v2400_v15 }
 0x9b7   : > { %7040 = vmatpush3.bf16.xpose.msk.msra.mxu1 %vm7804_vm2, %v8048_v61  ;;  %6176 = vmatprep.mubr.msk.f32.mxu1 %vm7639_vm0, %v9018_v18 }
 0x9b8   : > { %6158 = vmatmul.mubr.msk.f32.vlgmr.msra.gmra.mrb[22].mxu0 %vm411_vm1, %v2478_v60  ;;  %7041 = vmatprep.subr.bf16.mxu1 %v9019_v0 }
 0x9b9   : > { %7056 = vmatpush3.bf16.xpose.msk.msra.mxu0 %vm7804_vm2, %v8050_v2  ;;  %6195 = vmatprep.mubr.msk.f32.mxu0 %vm7639_vm0, %v9018_v18 }
 0x9ba   : > { %7057 = vmatprep.subr.bf16.mxu0 %v9019_v0 }
 0x9bf   : > { %7044 = vmatpush3.bf16.xpose.msk.msra.mxu1 %vm7804_vm2, %v8070_v20 }
 0x9c0   : > { %7045 = vmatprep.subr.bf16.mxu1 %v9019_v0 }
 0x9c1   : > { %7060 = vmatpush3.bf16.xpose.msk.msra.mxu0 %vm7804_vm2, %v8072_v22 }
 0x9c2   : > { %7061 = vmatprep.subr.bf16.mxu0 %v9019_v0 }
 0x9c7   : > { %7048 = vmatpush3.bf16.xpose.msk.msra.mxu1 %vm7804_vm2, %v8086_v28 }
 0x9c8   : > { %7049 = vmatprep.subr.bf16.mxu1 %v9019_v0 }
 0x9c9   : > { %7064 = vmatpush3.bf16.xpose.msk.msra.mxu0 %vm7804_vm2, %v8088_v31 }
 0x9ca   : > { %7065 = vmatprep.subr.bf16.mxu0 %v9019_v0 }
 0x9cf   : > { %7052 = vmatpush3.bf16.xpose.msk.msra.mxu1 %vm7804_vm2, %v8102_v43 }
 0x9d0   : > { %7069 = vmatprep.subr.bf16.mxu1 %v9019_v0 }
 0x9d1   : > { %7068 = vmatpush3.bf16.xpose.msk.msra.mxu0 %vm7804_vm2, %v8104_v45 }
 0x9d2   : > { %7081 = vmatprep.subr.bf16.mxu0 %v9019_v0 }
 0x9d6   : > { %6177 = vmatmul.mubr.msk.f32.vlgmr.msra.gmra.mrb[24].mxu1 %vm411_vm1, %v2556_v32 }
 0x9d7   : > { %7071 = vmatpush3.bf16.msra.mxu1 %v7811_v39  ;;  %6214 = vmatprep.mubr.msk.f32.mxu1 %vm7639_vm0, %v9018_v18 }
 0x9d8   : > { %6196 = vmatmul.mubr.msk.f32.vlgmr.msra.gmra.mrb[24].mxu0 %vm411_vm1, %v2634_v57  ;;  %7072 = vmatprep.subr.bf16.mxu1 %v9019_v0 }
 0x9d9   : > { %7083 = vmatpush3.bf16.msra.mxu0 %v7814_v41  ;;  %6233 = vmatprep.mubr.msk.f32.mxu0 %vm7639_vm0, %v9018_v18 }
 0x9da   : > { %7084 = vmatprep.subr.bf16.mxu0 %v9019_v0 }
 0x9db   : > { %7074 = vmatpush3.bf16.msra.mxu1 %v7828_v46 }
 0x9dc   : > { %7075 = vmatprep.subr.bf16.mxu1 %v9019_v0 }
 0x9dd   : > { %7086 = vmatpush3.bf16.msra.mxu0 %v7830_v47 }
 0x9de   : > { %7087 = vmatprep.subr.bf16.mxu0 %v9019_v0 }
 0x9df   : > { %7077 = vmatpush3.bf16.msra.mxu1 %v7844_v52 }
 0x9e0   : > { %7078 = vmatprep.subr.bf16.mxu1 %v9019_v0 }
 0x9e1   : > { %7089 = vmatpush3.bf16.msra.mxu0 %v7846_v53 }
 0x9e2   : > { %7090 = vmatprep.subr.bf16.mxu0 %v9019_v0 }
 0x9e3   : > { %7080 = vmatpush3.bf16.msra.mxu1 %v7860_v58 }
 0x9e4   : > { %7093 = vmatprep.subr.bf16.mxu1 %v9019_v0 }
 0x9e5   : > { %7092 = vmatpush3.bf16.msra.mxu0 %v7862_v59 }
 0x9e6   : > { %7105 = vmatprep.subr.bf16.mxu0 %v9019_v0 }
 0xa49   : > { %v2157_v36 = vpop.f32.mrb[18].mxu1 }
 0xa4a   : > { %v6064_v34 = vpop.f32.mrb[19].mxu1  ;;  %v2707_v48 = vsel %vm1222_vm3, %v2157_v36, -inf }
 0xa4b   : > { %v2235_v3 = vpop.f32.mrb[18].mxu0  ;;  %2708 = vmax.xlane.f32.xlu1 %v2707_v48 }
 0xa4c   : > { %v6083_v26 = vpop.f32.mrb[19].mxu0  ;;  %v2710_v51 = vsel %vm1222_vm3, %v2235_v3, -inf }
 0xa4d   : > { %2711 = vmax.xlane.f32.xlu0 %v2710_v51 }
 0xa69   : > { %v2313_v8 = vpop.f32.mrb[20].mxu1 }
 0xa6a   : > { %v6102_v9 = vpop.f32.mrb[21].mxu1  ;;  %v2713_v56 = vsel %vm1222_vm3, %v2313_v8, -inf }
 0xa6b   : > { %v2391_v17 = vpop.f32.mrb[20].mxu0  ;;  %2714 = vmax.xlane.f32.xlu0 %v2713_v56 }
 0xa6c   : > { %v6121_v33 = vpop.f32.mrb[21].mxu0  ;;  %v2716_v5 = vsel %vm1222_vm3, %v2391_v17, -inf }
 0xa6d   : > { %2717 = vmax.xlane.f32.xlu1 %v2716_v5 }
 0xa89   : > { %v2469_v27 = vpop.f32.mrb[22].mxu1 }
 0xa8a   : > { %v6140_v25 = vpop.f32.mrb[23].mxu1  ;;  %v2719_v15 = vsel %vm1222_vm3, %v2469_v27, -inf }
 0xa8b   : > { %v2547_v60 = vpop.f32.mrb[22].mxu0  ;;  %2720 = vmax.xlane.f32.xlu0 %v2719_v15 }
 0xa8c   : > { %v6159_v32 = vpop.f32.mrb[23].mxu0  ;;  %v2722_v57 = vsel %vm1222_vm3, %v2547_v60, -inf }
 0xa8d   : > { %2723 = vmax.xlane.f32.xlu1 %v2722_v57 }
 0xaa9   : > { %v2625_v34 = vpop.f32.mrb[24].mxu1 }
 0xaaa   : > { %v6178_v48 = vpop.f32.mrb[25].mxu1  ;;  %v2725_v26 = vsel %vm1222_vm3, %v2625_v34, -inf }
 0xaab   : > { %v2703_v51 = vpop.f32.mrb[24].mxu0  ;;  %2726 = vmax.xlane.f32.xlu0 %v2725_v26 }
 0xaac   : > { %v6197_v9 = vpop.f32.mrb[25].mxu0  ;;  %v2728_v56 = vsel %vm1222_vm3, %v2703_v51, -inf }
 0xaad   : > { %2729 = vmax.xlane.f32.xlu1 %v2728_v56 }
 0xad8   : > { %v2709_v33 = vpop.xlane.xlu1 %2708 }
 0xad9   : > { %v2731_v5 = vsub.f32 %v2157_v36, %v2709_v33 }
 0xada   : > { %v2712_v25 = vpop.xlane.xlu0 %2711 }
 0xadb   : > { %v2739_v11 = vmul.f32 1.442695, %v2731_v5  ;;  %v2732_v1 = vsub.f32 %v2235_v3, %v2712_v25 }
 0xadd   : > { %7501 = vpow2.f32 %v2739_v11  ;;  %v2741_v15 = vmul.f32 1.442695, %v2732_v1 }
 0xadf   : > { %7503 = vpow2.f32 %v2741_v15 }
 0xae7   : > { %v7502_v32 = vpop.eup %7501 }
 0xae8   : > { %v2755_v57 = vsel %vm1222_vm3, %v7502_v32, 0.0 }
 0xae9   : > { %v7504_v48 = vpop.eup %7503  ;;  %2756 = vadd.xlane.f32.xlu0 %v2755_v57 }
 0xaea   : > { %v2758_v6 = vsel %vm1222_vm3, %v7504_v48, 0.0 }
 0xaeb   : > { %2759 = vadd.xlane.f32.xlu1 %v2758_v6 }
 0xaf8   : > { %v2715_v26 = vpop.xlane.xlu0 %2714 }
 0xaf9   : > { %v2733_v9 = vsub.f32 %v2313_v8, %v2715_v26 }
 0xafa   : > { %v2718_v40 = vpop.xlane.xlu1 %2717 }
 0xafb   : > { %v2743_v56 = vmul.f32 1.442695, %v2733_v9  ;;  %v2734_v59 = vsub.f32 %v2391_v17, %v2718_v40 }
 0xafd   : > { %7505 = vpow2.f32 %v2743_v56  ;;  %v2745_v36 = vmul.f32 1.442695, %v2734_v59 }
 0xaff   : > { %7507 = vpow2.f32 %v2745_v36 }
 0xb07   : > { %v8499_v3 = vpop.eup %7505 }
 0xb08   : > { %v2761_v1 = vsel %vm1222_vm3, %v8499_v3, 0.0 }
 0xb09   : > { %v8503_v11 = vpop.eup %7507  ;;  %2762 = vadd.xlane.f32.xlu0 %v2761_v1 }
 0xb0a   : > { %v2764_v33 = vsel %vm1222_vm3, %v8503_v11, 0.0 }
 0xb0b   : > { %2765 = vadd.xlane.f32.xlu1 %v2764_v33 }
 0xb18   : > { %v2721_v6 = vpop.xlane.xlu0 %2720 }
 0xb19   : > { %v2735_v8 = vsub.f32 %v2469_v27, %v2721_v6 }
 0xb1a   : > { %v2724_v5 = vpop.xlane.xlu1 %2723 }
 0xb1b   : > { %v2747_v25 = vmul.f32 1.442695, %v2735_v8  ;;  %v2736_v40 = vsub.f32 %v2547_v60, %v2724_v5 }
 0xb1d   : > { %7509 = vpow2.f32 %v2747_v25  ;;  %v2749_v59 = vmul.f32 1.442695, %v2736_v40 }
 0xb1f   : > { %7511 = vpow2.f32 %v2749_v59 }
 0xb27   : > { %v8507_v17 = vpop.eup %7509 }
 0xb28   : > { %v2767_v15 = vsel %vm1222_vm3, %v8507_v17, 0.0 }
 0xb29   : > { %v8511_v57 = vpop.eup %7511  ;;  %2768 = vadd.xlane.f32.xlu0 %v2767_v15 }
 0xb2a   : > { %v2770_v26 = vsel %vm1222_vm3, %v8511_v57, 0.0 }
 0xb2b   : > { %2771 = vadd.xlane.f32.xlu1 %v2770_v26 }
 0xb38   : > { %v2727_v9 = vpop.xlane.xlu0 %2726 }
 0xb39   : > { %v2737_v27 = vsub.f32 %v2625_v34, %v2727_v9 }
 0xb3a   : > { %v2730_v56 = vpop.xlane.xlu1 %2729 }
 0xb3b   : > { %v2751_v36 = vmul.f32 1.442695, %v2737_v27  ;;  %v2738_v60 = vsub.f32 %v2703_v51, %v2730_v56 }
 0xb3d   : > { %7513 = vpow2.f32 %v2751_v36  ;;  %v2753_v1 = vmul.f32 1.442695, %v2738_v60 }
 0xb3f   : > { %7515 = vpow2.f32 %v2753_v1 }
 0xb47   : > { %v8515_v33 = vpop.eup %7513 }
 0xb48   : > { %v2773_v6 = vsel %vm1222_vm3, %v8515_v33, 0.0 }
 0xb49   : > { %v8519_v8 = vpop.eup %7515  ;;  %2774 = vadd.xlane.f32.xlu0 %v2773_v6 }
 0xb4a   : > { %v2776_v5 = vsel %vm1222_vm3, %v8519_v8, 0.0 }
 0xb4b   : > { %2777 = vadd.xlane.f32.xlu1 %v2776_v5 }
 0xb5f   : > { %3379 = vrot.lane.b32.xlu0 %v8326_v24, %s7642_s6 }
 0xb76   : > { %v2757_v34 = vpop.xlane.xlu0 %2756 }
 0xb77   : > { %7517 = vrcp.f32 %v2757_v34 }
 0xb78   : > { %v2760_v51 = vpop.xlane.xlu1 %2759 }
 0xb79   : > { %7519 = vrcp.f32 %v2760_v51 }
 0xb81   : > { %v7518_v25 = vpop.eup %7517 }
 0xb82   : > { %v2780_v40 = vmul.f32 %v7518_v25, %v7502_v32 }
 0xb83   : > { %v7520_v59 = vpop.eup %7519 }
 0xb84   : > { %v2782_v15 = vmul.f32 %v7520_v59, %v7504_v48  ;;  %6215 = vmatmul.mubr.msk.f32.vlgmr.msra.gmra.mrb[26].mxu1 %vm1311_vm4, %v2780_v40 }
 0xb85   : > { %7095 = vmatpush3.bf16.msra.mxu1 %v7908_v42  ;;  %6252 = vmatprep.mubr.msk.f32.mxu1 %vm7639_vm0, %v9018_v18 }
 0xb86   : > { %6234 = vmatmul.mubr.msk.f32.vlgmr.msra.gmra.mrb[26].mxu0 %vm1311_vm4, %v2782_v15  ;;  %7096 = vmatprep.subr.bf16.mxu1 %v9019_v0 }
 0xb87   : > { %7107 = vmatpush3.bf16.msra.mxu0 %v7910_v44  ;;  %6271 = vmatprep.mubr.msk.f32.mxu0 %vm7639_vm0, %v9018_v18 }
 0xb88   : > { %7108 = vmatprep.subr.bf16.mxu0 %v9019_v0 }
 0xb89   : > { %7098 = vmatpush3.bf16.msra.mxu1 %v7930_v54 }
 0xb8a   : > { %7099 = vmatprep.subr.bf16.mxu1 %v9019_v0 }
 0xb8b   : > { %7110 = vmatpush3.bf16.msra.mxu0 %v7932_v55 }
 0xb8c   : > { %7111 = vmatprep.subr.bf16.mxu0 %v9019_v0 }
 0xb8d   : > { %7101 = vmatpush3.bf16.msra.mxu1 %v7946_v62 }
 0xb8e   : > { %7102 = vmatprep.subr.bf16.mxu1 %v9019_v0 }
 0xb8f   : > { %7113 = vmatpush3.bf16.msra.mxu0 %v7948_v63 }
 0xb90   : > { %7114 = vmatprep.subr.bf16.mxu0 %v9019_v0 }
 0xb91   : > { %7104 = vmatpush3.bf16.msra.mxu1 %v7962_v12 }
 0xb92   : > { %7117 = vmatprep.subr.bf16.mxu1 %v9019_v0 }
 0xb93   : > { %7116 = vmatpush3.bf16.msra.mxu0 %v7964_v14 }
 0xb94   : > { %7129 = vmatprep.subr.bf16.mxu0 %v9019_v0 }
 0xb96   : > { %v2763_v32 = vpop.xlane.xlu0 %2762 }
 0xb97   : > { %7521 = vrcp.f32 %v2763_v32 }
 0xb98   : > { %v2766_v48 = vpop.xlane.xlu1 %2765 }
 0xb99   : > { %7523 = vrcp.f32 %v2766_v48 }
 0xba1   : > { %v7522_v26 = vpop.eup %7521 }
 0xba2   : > { %v2784_v9 = vmul.f32 %v7522_v26, %v8499_v3 }
 0xba3   : > { %v7524_v27 = vpop.eup %7523 }
 0xba4   : > { %v2786_v56 = vmul.f32 %v7524_v27, %v8503_v11  ;;  %6253 = vmatmul.mubr.msk.f32.vlgmr.msra.gmra.mrb[28].mxu1 %vm1311_vm4, %v2784_v9 }
 0xba5   : > { %7119 = vmatpush3.bf16.msra.mxu1 %v7978_v21  ;;  %6290 = vmatprep.mubr.msk.f32.mxu1 %vm7639_vm0, %v9018_v18 }
 0xba6   : > { %6272 = vmatmul.mubr.msk.f32.vlgmr.msra.gmra.mrb[28].mxu0 %vm1311_vm4, %v2786_v56  ;;  %7120 = vmatprep.subr.bf16.mxu1 %v9019_v0 }
 0xba7   : > { %7131 = vmatpush3.bf16.msra.mxu0 %v7980_v23  ;;  %6309 = vmatprep.mubr.msk.f32.mxu0 %vm7639_vm0, %v9018_v18 }
 0xba8   : > { %7132 = vmatprep.subr.bf16.mxu0 %v9019_v0 }
 0xba9   : > { %7122 = vmatpush3.bf16.msra.mxu1 %v8000_v29 }
 0xbaa   : > { %7123 = vmatprep.subr.bf16.mxu1 %v9019_v0 }
 0xbab   : > { %7134 = vmatpush3.bf16.msra.mxu0 %v8002_v30 }
 0xbac   : > { %7135 = vmatprep.subr.bf16.mxu0 %v9019_v0 }
 0xbad   : > { %7125 = vmatpush3.bf16.msra.mxu1 %v8016_v37 }
 0xbae   : > { %7126 = vmatprep.subr.bf16.mxu1 %v9019_v0 }
 0xbaf   : > { %7137 = vmatpush3.bf16.msra.mxu0 %v8018_v38 }
 0xbb0   : > { %7138 = vmatprep.subr.bf16.mxu0 %v9019_v0 }
 0xbb1   : > { %7128 = vmatpush3.bf16.msra.mxu1 %v8032_v49 }
 0xbb2   : > { %7141 = vmatprep.subr.bf16.mxu1 %v9019_v0 }
 0xbb3   : > { %7140 = vmatpush3.bf16.msra.mxu0 %v8034_v50 }
 0xbb4   : > { %7153 = vmatprep.subr.bf16.mxu0 %v9019_v0 }
 0xbb6   : > { %v2769_v3 = vpop.xlane.xlu0 %2768 }
 0xbb7   : > { %7525 = vrcp.f32 %v2769_v3 }
 0xbb8   : > { %v2772_v11 = vpop.xlane.xlu1 %2771 }
 0xbb9   : > { %7527 = vrcp.f32 %v2772_v11 }
 0xbc1   : > { %v7526_v36 = vpop.eup %7525 }
 0xbc2   : > { %v2788_v60 = vmul.f32 %v7526_v36, %v8507_v17 }
 0xbc3   : > { %v7528_v1 = vpop.eup %7527 }
 0xbc4   : > { %v2790_v6 = vmul.f32 %v7528_v1, %v8511_v57  ;;  %6291 = vmatmul.mubr.msk.f32.vlgmr.msra.gmra.mrb[30].mxu1 %vm1311_vm4, %v2788_v60 }
 0xbc5   : > { %7143 = vmatpush3.bf16.msra.mxu1 %v8048_v61  ;;  %6328 = vmatprep.mubr.msk.f32.mxu1 %vm7639_vm0, %v9018_v18 }
 0xbc6   : > { %6310 = vmatmul.mubr.msk.f32.vlgmr.msra.gmra.mrb[30].mxu0 %vm1311_vm4, %v2790_v6  ;;  %7144 = vmatprep.subr.bf16.mxu1 %v9019_v0 }
 0xbc7   : > { %7155 = vmatpush3.bf16.msra.mxu0 %v8050_v2  ;;  %6347 = vmatprep.mubr.msk.f32.mxu0 %vm7639_vm0, %v9018_v18 }
 0xbc8   : > { %7156 = vmatprep.subr.bf16.mxu0 %v9019_v0 }
 0xbc9   : > { %7146 = vmatpush3.bf16.msra.mxu1 %v8070_v20 }
 0xbca   : > { %7147 = vmatprep.subr.bf16.mxu1 %v9019_v0 }
 0xbcb   : > { %7158 = vmatpush3.bf16.msra.mxu0 %v8072_v22 }
 0xbcc   : > { %7159 = vmatprep.subr.bf16.mxu0 %v9019_v0 }
 0xbcd   : > { %7149 = vmatpush3.bf16.msra.mxu1 %v8086_v28 }
 0xbce   : > { %7150 = vmatprep.subr.bf16.mxu1 %v9019_v0 }
 0xbcf   : > { %7161 = vmatpush3.bf16.msra.mxu0 %v8088_v31 }
 0xbd0   : > { %7162 = vmatprep.subr.bf16.mxu0 %v9019_v0 }
 0xbd1   : > { %7152 = vmatpush3.bf16.msra.mxu1 %v8102_v43 }
 0xbd2   : > { %7165 = vmatprep.subr.bf16.mxu1 %v9019_v0 }
 0xbd3   : > { %7164 = vmatpush3.bf16.msra.mxu0 %v8104_v45 }
 0xbd4   : > { %7183 = vmatprep.subr.bf16.mxu0 %v9019_v0 }
 0xbd6   : > { %v2775_v17 = vpop.xlane.xlu0 %2774 }
 0xbd7   : > { %7529 = vrcp.f32 %v2775_v17 }
 0xbd8   : > { %v2778_v57 = vpop.xlane.xlu1 %2777 }
 0xbd9   : > { %7531 = vrcp.f32 %v2778_v57 }
 0xbe1   : > { %v7530_v5 = vpop.eup %7529 }
 0xbe2   : > { %v2792_v34 = vmul.f32 %v7530_v5, %v8515_v33 }
 0xbe3   : > { %v7532_v51 = vpop.eup %7531 }
 0xbe4   : > { %v2794_v25 = vmul.f32 %v7532_v51, %v8519_v8  ;;  %6329 = vmatmul.mubr.msk.f32.vlgmr.msra.gmra.mrb[32].mxu1 %vm1311_vm4, %v2792_v34 }
 0xbe5   : > { %7167 = vmatpush3.bf16.msra.mxu1 %v7724_v4  ;;  %6374 = vmatprep.mubr.msk.f32.mxu1 %vm7639_vm0, %v9018_v18 }
 0xbe6   : > { %6348 = vmatmul.mubr.msk.f32.vlgmr.msra.gmra.mrb[32].mxu0 %vm1311_vm4, %v2794_v25  ;;  %7168 = vmatprep.subr.bf16.mxu1 %v9019_v0 }
 0xbe7   : > { %7186 = vmatpush3.bf16.xpose.msk.msra.mxu0 %vm7804_vm2, %v7811_v39  ;;  %6393 = vmatprep.mubr.msk.f32.mxu0 %vm7639_vm0, %v9018_v18 }
 0xbe8   : > { %7187 = vmatprep.subr.bf16.mxu0 %v9019_v0 }
 0xbe9   : > { %7170 = vmatpush3.bf16.msra.mxu1 %v7735_v7 }
 0xbea   : > { %7171 = vmatprep.subr.bf16.mxu1 %v9019_v0 }
 0xbed   : > { %7173 = vmatpush3.bf16.msra.mxu1 %v7745_v10 }
 0xbee   : > { %7174 = vmatprep.subr.bf16.mxu1 %v9019_v0 }
 0xbef   : > { %7190 = vmatpush3.bf16.xpose.msk.msra.mxu0 %vm7804_vm2, %v7828_v46 }
 0xbf0   : > { %7191 = vmatprep.subr.bf16.mxu0 %v9019_v0 }
 0xbf1   : > { %7176 = vmatpush3.bf16.msra.mxu1 %v7755_v13 }
 0xbf2   : > { %7177 = vmatprep.subr.bf16.mxu1 %v9019_v0 }
 0xbf5   : > { %7179 = vmatpush3.bf16.msra.mxu1 %v7765_v16 }
 0xbf6   : > { %7180 = vmatprep.subr.bf16.mxu1 %v9019_v0 }
 0xbf7   : > { %7194 = vmatpush3.bf16.xpose.msk.msra.mxu0 %vm7804_vm2, %v7844_v52 }
 0xbf8   : > { %7195 = vmatprep.subr.bf16.mxu0 %v9019_v0 }
 0xbf9   : > { %7182 = vmatpush3.bf16.msra.mxu1 %v7775_v19 }
 0xbfa   : > { %7199 = vmatprep.subr.bf16.mxu1 %v9019_v0 }
 0xbff   : > { %7198 = vmatpush3.bf16.xpose.msk.msra.mxu0 %vm7804_vm2, %v7860_v58 }
 0xc00   : > { %7215 = vmatprep.subr.bf16.mxu0 %v9019_v0 }
 0xc57   : > { %v2864_v4 = vpop.f32.mrb[26].mxu1 }
 0xc58   : > { %v6216_v7 = vpop.f32.mrb[27].mxu1 }
 0xc59   : > { %v2937_v10 = vpop.f32.mrb[26].mxu0 }
 0xc5a   : > { %v3390_v13 = vrot.slane %v2937_v10, 7  ;;  %v6235_v16 = vpop.f32.mrb[27].mxu0  ;;  %v3380_v10 = vpop.permute.xlu0 %3379 }
 0xc5c   : > { %v3391_v33 = vsel %vm1908_vm5, %v3390_v13, %v2864_v4 }
 0xc77   : > { %v3010_v8 = vpop.f32.mrb[28].mxu1 }
 0xc78   : > { %v3392_v40 = vrot.slane %v3010_v8, 6  ;;  %v6254_v59 = vpop.f32.mrb[29].mxu1 }
 0xc79   : > { %v3083_v15 = vpop.f32.mrb[28].mxu0 }
 0xc7a   : > { %v3393_v19 = vsel %vm1911_vm6, %v3392_v40, %v3391_v33  ;;  %v3394_v32 = vrot.slane %v3083_v15, 5  ;;  %v6273_v48 = vpop.f32.mrb[29].mxu0  ;;  %v9023_v40 = vld [vmem:[#allocation8_spill] sm:$0xff] }
 0xc7c   : > { %v3395_v26 = vsel %vm1914_vm7, %v3394_v32, %v3393_v19 }
 0xc97   : > { %v3156_v9 = vpop.f32.mrb[30].mxu1 }
 0xc98   : > { %v3396_v27 = vrot.slane %v3156_v9, 4  ;;  %v6292_v56 = vpop.f32.mrb[31].mxu1 }
 0xc99   : > { %v3229_v3 = vpop.f32.mrb[30].mxu0 }
 0xc9a   : > { %v3397_v11 = vsel %vm1917_vm8, %v3396_v27, %v3395_v26  ;;  %v3398_v36 = vrot.slane %v3229_v3, 3  ;;  %v6311_v60 = vpop.f32.mrb[31].mxu0  ;;  %v9024_v3 = vld [vmem:[#allocation9_spill] sm:$0xff] }
 0xc9c   : > { %v3399_v1 = vsel %vm1920_vm9, %v3398_v36, %v3397_v11 }
 0xcb7   : > { %v3302_v6 = vpop.f32.mrb[32].mxu1 }
 0xcb8   : > { %v3400_v17 = vrot.slane %v3302_v6, 2  ;;  %v6330_v57 = vpop.f32.mrb[33].mxu1 }
 0xcb9   : > { %v3375_v5 = vpop.f32.mrb[32].mxu0 }
 0xcba   : > { %v3402_v34 = vrot.slane %v3375_v5, 1  ;;  %v6349_v51 = vpop.f32.mrb[33].mxu0  ;;  %v3401_v25 = vsel %vm1923_vm10, %v3400_v17, %v3399_v1  ;;  %v9025_v5 = vld [vmem:[#allocation6_spill] sm:$0xff] }
 0xcbc   : > { %v3403_v4 = vsel %vm1926_vm11, %v3402_v34, %v3401_v25 }
 0xcbd   : > { %3404 = vrot.lane.b32.xlu1 %v3403_v4, %s7642_s6 }
 0xcc1   : > { %3407 = vrot.lane.b32.xlu1 %v8326_v24, %s7644_s17  ;;  %v9022_v24 = vld [vmem:[#allocation5_spill] sm:$0xff] }
 0xd2f   : > { %v3405_v7 = vpop.permute.xlu1 %3404 }
 0xd30   : > { %v3410_v13 = vsel %vm411_vm1, %v3380_v10, %v3405_v7  ;;  %v9026_v7 = vld [vmem:[#allocation7_spill] sm:$0xff] }
 0xd33   : > { %v3408_v16 = vpop.permute.xlu1 %3407 }
 0xd34   : > { %v3411_v33 = vsel %vm1311_vm4, %v3410_v13, %v3408_v16 }
 0xd35   : > { %6375 = vmatmul.mubr.msk.f32.vlgmr.msra.gmra.mrb[34].mxu1 %vm257_vm12, %v3411_v33 }
 0xd36   : > { %7202 = vmatpush3.bf16.xpose.msk.msra.mxu1 %vm7804_vm2, %v7814_v41  ;;  %6412 = vmatprep.mubr.msk.f32.mxu1 %vm7639_vm0, %v9018_v18 }
 0xd37   : > { %7203 = vmatprep.subr.bf16.mxu1 %v9019_v0 }
 0xd3e   : > { %7206 = vmatpush3.bf16.xpose.msk.msra.mxu1 %vm7804_vm2, %v7830_v47 }
 0xd3f   : > { %7207 = vmatprep.subr.bf16.mxu1 %v9019_v0 }
 0xd46   : > { %7210 = vmatpush3.bf16.xpose.msk.msra.mxu1 %vm7804_vm2, %v7846_v53 }
 0xd47   : > { %7211 = vmatprep.subr.bf16.mxu1 %v9019_v0 }
 0xd4e   : > { %7214 = vmatpush3.bf16.xpose.msk.msra.mxu1 %vm7804_vm2, %v9022_v24 }
 0xd4f   : > { %7231 = vmatprep.subr.bf16.mxu1 %v9019_v0 }
 0xe08   : > { %v3481_v8 = vpop.f32.mrb[34].mxu1 }
 0xe09   : > { %v3482_v59 = vadd.f32 %v9023_v40, %v3481_v8  ;;  %v6376_v15 = vpop.f32.mrb[35].mxu1 }
 0xe0b   : > { %7533 = vtanh.f32 %v3482_v59  ;;  %v5131_v32 = vmul.f32 -1.442695, %v3482_v59 }
 0xe0d   : > { %7535 = vpow2.f32 %v5131_v32 }
 0xe15   : > { %v7534_v19 = vpop.eup %7533 }
 0xe16   : > { %3494 = vrot.lane.b32.xlu0 %v7534_v19, %s7641_s5 }
 0xe17   : > { %v7536_v48 = vpop.eup %7535 }
 0xe18   : > { %v3488_v26 = vadd.f32 1.0, %v7536_v48 }
 0xe1a   : > { %7537 = vrcp.f32 %v3488_v26 }
 0xe24   : > { %v7538_v9 = vpop.eup %7537 }
 0xe25   : > { %v3492_v11 = vmul.f32 %v7538_v9, %v9024_v3 }
 0xe88   : > { %v3495_v27 = vpop.permute.xlu0 %3494 }
 0xe89   : > { %v3497_v56 = vmul.f32 %v7538_v9, %v3495_v27 }
 0xe8b   : > { %3499 = vrot.lane.b32.xlu1 %v3497_v56, %s7642_s6 }
 0xefd   : > { %v3500_v36 = vpop.permute.xlu1 %3499 }
 0xefe   : > { %v3502_v60 = vadd.f32 %v3500_v36, %v3492_v11 }
 0xf00   : > { %7539 = vtanh.f32 %v3502_v60 }
 0xf0a   : > { %v7540_v1 = vpop.eup %7539 }
 0xf0b   : > { %3505 = vrot.lane.b32.xlu0 %v7540_v1, %s7641_s5  ;;  %s4886_s5 = scalar_lea.sflag [#allocation3], %s164_s24 }
 0xf7d   : > { %v3506_v6 = vpop.permute.xlu0 %3505 }
 0xf7e   : > { %v8667_v17 = vmul.f32 %v7538_v9, %v3506_v6 }
 0xf80   : > { %v3510_v57 = vcombine.high %v8667_v17, %v8667_v17  ;;  %v3517_v34 = vrot.slane %v8667_v17, %v9025_v5 }
 0xf82   : > { %v3524_v51 = vrot.slane %v3510_v57, %v9025_v5  ;;  %v3525_v25 = vcombine.high %v3517_v34, %v3517_v34  ;;  %v3533_v4 = vrot.slane %v3517_v34, %v9025_v5 }
 0xf84   : > { %v3562_v10 = vrot.slane %v3533_v4, %v9026_v7  ;;  %v3547_v13 = vrot.slane %v3525_v25, %v9025_v5  ;;  %v3555_v16 = vcombine.high %v3533_v4, %v3533_v4  ;;  %v3526_v40 = vcombine.high %v3524_v51, %v3524_v51 }
 0xf85   : > { %v3540_v15 = vrot.slane %v3524_v51, %v9025_v5 }
 0xf86   : > { %3563 = vrot.lane.b32.xlu1 %v3562_v10, %s7642_s6  ;;  %v3640_v33 = vrot.slane %v3547_v13, %v9026_v7  ;;  %v3557_v8 = vcombine.high %v3547_v13, %v3547_v13  ;;  %v3718_v59 = vrot.slane %v3555_v16, %v9026_v7  ;;  %v3554_v32 = vrot.slane %v3526_v40, %v9025_v5 }
 0xf87   : > { %v3874_v48 = vrot.slane %v3540_v15, %v9026_v7  ;;  %v3556_v26 = vcombine.high %v3540_v15, %v3540_v15 }
 0xf88   : > { %3641 = vrot.lane.b32.xlu0 %v3640_v33, %s7642_s6  ;;  %v3796_v19 = vrot.slane %v3557_v8, %v9026_v7  ;;  %v3952_v9 = vrot.slane %v3554_v32, %v9026_v7  ;;  %v3558_v27 = vcombine.high %v3554_v32, %v3554_v32 }
 0xf89   : > { %v4030_v56 = vrot.slane %v3556_v26, %v9026_v7 }
 0xf8a   : > { %3719 = vrot.lane.b32.xlu1 %v3718_v59, %s7642_s6  ;;  %v4108_v3 = vrot.slane %v3558_v27, %v9026_v7 }
 0xf8c   : > { %3797 = vrot.lane.b32.xlu0 %v3796_v19, %s7642_s6 }
 0xf8e   : > { %3875 = vrot.lane.b32.xlu1 %v3874_v48, %s7642_s6 }
 0xf90   : > { %3953 = vrot.lane.b32.xlu0 %v3952_v9, %s7642_s6 }
 0xf92   : > { %4031 = vrot.lane.b32.xlu1 %v4030_v56, %s7642_s6 }
 0xf94   : > { %4109 = vrot.lane.b32.xlu0 %v4108_v3, %s7642_s6 }
 0xff8   : > { %v3564_v11 = vpop.permute.xlu1 %3563 }
 0xff9   : > { %6394 = vmatmul.mubr.msk.f32.vlgmr.msra.gmra.mrb[34].mxu0 %vm411_vm1, %v3564_v11 }
 0xffa   : > { %7218 = vmatpush3.bf16.xpose.msk.msra.mxu0 %vm7804_vm2, %v7908_v42  ;;  %v3642_v36 = vpop.permute.xlu0 %3641  ;;  %6431 = vmatprep.mubr.msk.f32.mxu0 %vm7639_vm0, %v9018_v18 }
 0xffb   : > { %6413 = vmatmul.mubr.msk.f32.vlgmr.msra.gmra.mrb[36].mxu1 %vm411_vm1, %v3642_v36  ;;  %7219 = vmatprep.subr.bf16.mxu0 %v9019_v0 }
 0xffc   : > { %7234 = vmatpush3.bf16.xpose.msk.msra.mxu1 %vm7804_vm2, %v7910_v44  ;;  %6450 = vmatprep.mubr.msk.f32.mxu1 %vm7639_vm0, %v9018_v18  ;;  %v3720_v60 = vpop.permute.xlu1 %3719 }
 0xffd   : > { %7235 = vmatprep.subr.bf16.mxu1 %v9019_v0 }
 0xffe   : > { %v3798_v1 = vpop.permute.xlu0 %3797 }
0x1000   : > { %v3876_v6 = vpop.permute.xlu1 %3875 }
0x1002   : > { %7222 = vmatpush3.bf16.xpose.msk.msra.mxu0 %vm7804_vm2, %v7930_v54  ;;  %v3954_v57 = vpop.permute.xlu0 %3953 }
0x1003   : > { %7223 = vmatprep.subr.bf16.mxu0 %v9019_v0 }
0x1004   : > { %7238 = vmatpush3.bf16.xpose.msk.msra.mxu1 %vm7804_vm2, %v7932_v55  ;;  %v4032_v5 = vpop.permute.xlu1 %4031 }
0x1005   : > { %7239 = vmatprep.subr.bf16.mxu1 %v9019_v0 }
0x1006   : > { %v4110_v34 = vpop.permute.xlu0 %4109 }
0x100a   : > { %7226 = vmatpush3.bf16.xpose.msk.msra.mxu0 %vm7804_vm2, %v7946_v62 }
0x100b   : > { %7227 = vmatprep.subr.bf16.mxu0 %v9019_v0 }
0x100c   : > { %7242 = vmatpush3.bf16.xpose.msk.msra.mxu1 %vm7804_vm2, %v7948_v63 }
0x100d   : > { %7243 = vmatprep.subr.bf16.mxu1 %v9019_v0 }
0x1012   : > { %7230 = vmatpush3.bf16.xpose.msk.msra.mxu0 %vm7804_vm2, %v7962_v12 }
0x1013   : > { %7247 = vmatprep.subr.bf16.mxu0 %v9019_v0 }
0x1014   : > { %7246 = vmatpush3.bf16.xpose.msk.msra.mxu1 %vm7804_vm2, %v7964_v14 }
0x1015   : > { %7263 = vmatprep.subr.bf16.mxu1 %v9019_v0 }
0x1019   : > { %6432 = vmatmul.mubr.msk.f32.vlgmr.msra.gmra.mrb[36].mxu0 %vm411_vm1, %v3720_v60 }
0x101a   : > { %7250 = vmatpush3.bf16.xpose.msk.msra.mxu0 %vm7804_vm2, %v7978_v21  ;;  %6469 = vmatprep.mubr.msk.f32.mxu0 %vm7639_vm0, %v9018_v18 }
0x101b   : > { %6451 = vmatmul.mubr.msk.f32.vlgmr.msra.gmra.mrb[38].mxu1 %vm411_vm1, %v3798_v1  ;;  %7251 = vmatprep.subr.bf16.mxu0 %v9019_v0 }
0x101c   : > { %7266 = vmatpush3.bf16.xpose.msk.msra.mxu1 %vm7804_vm2, %v7980_v23  ;;  %6488 = vmatprep.mubr.msk.f32.mxu1 %vm7639_vm0, %v9018_v18 }
0x101d   : > { %7267 = vmatprep.subr.bf16.mxu1 %v9019_v0 }
0x1022   : > { %7254 = vmatpush3.bf16.xpose.msk.msra.mxu0 %vm7804_vm2, %v8000_v29 }
0x1023   : > { %7255 = vmatprep.subr.bf16.mxu0 %v9019_v0 }
0x1024   : > { %7270 = vmatpush3.bf16.xpose.msk.msra.mxu1 %vm7804_vm2, %v8002_v30 }
0x1025   : > { %7271 = vmatprep.subr.bf16.mxu1 %v9019_v0 }
0x102a   : > { %7258 = vmatpush3.bf16.xpose.msk.msra.mxu0 %vm7804_vm2, %v8016_v37 }
0x102b   : > { %7259 = vmatprep.subr.bf16.mxu0 %v9019_v0 }
0x102c   : > { %7274 = vmatpush3.bf16.xpose.msk.msra.mxu1 %vm7804_vm2, %v8018_v38 }
0x102d   : > { %7275 = vmatprep.subr.bf16.mxu1 %v9019_v0 }
0x1032   : > { %7262 = vmatpush3.bf16.xpose.msk.msra.mxu0 %vm7804_vm2, %v8032_v49 }
0x1033   : > { %7279 = vmatprep.subr.bf16.mxu0 %v9019_v0 }
0x1034   : > { %7278 = vmatpush3.bf16.xpose.msk.msra.mxu1 %vm7804_vm2, %v8034_v50 }
0x1035   : > { %7295 = vmatprep.subr.bf16.mxu1 %v9019_v0 }
0x1039   : > { %6470 = vmatmul.mubr.msk.f32.vlgmr.msra.gmra.mrb[38].mxu0 %vm411_vm1, %v3876_v6 }
0x103a   : > { %7282 = vmatpush3.bf16.xpose.msk.msra.mxu0 %vm7804_vm2, %v8048_v61  ;;  %6507 = vmatprep.mubr.msk.f32.mxu0 %vm7639_vm0, %v9018_v18 }
0x103b   : > { %6489 = vmatmul.mubr.msk.f32.vlgmr.msra.gmra.mrb[40].mxu1 %vm411_vm1, %v3954_v57  ;;  %7283 = vmatprep.subr.bf16.mxu0 %v9019_v0 }
0x103c   : > { %7298 = vmatpush3.bf16.xpose.msk.msra.mxu1 %vm7804_vm2, %v8050_v2  ;;  %6526 = vmatprep.mubr.msk.f32.mxu1 %vm7639_vm0, %v9018_v18 }
0x103d   : > { %7299 = vmatprep.subr.bf16.mxu1 %v9019_v0 }
0x1042   : > { %7286 = vmatpush3.bf16.xpose.msk.msra.mxu0 %vm7804_vm2, %v8070_v20 }
0x1043   : > { %7287 = vmatprep.subr.bf16.mxu0 %v9019_v0 }
0x1044   : > { %7302 = vmatpush3.bf16.xpose.msk.msra.mxu1 %vm7804_vm2, %v8072_v22 }
0x1045   : > { %7303 = vmatprep.subr.bf16.mxu1 %v9019_v0 }
0x104a   : > { %7290 = vmatpush3.bf16.xpose.msk.msra.mxu0 %vm7804_vm2, %v8086_v28 }
0x104b   : > { %7291 = vmatprep.subr.bf16.mxu0 %v9019_v0 }
0x104c   : > { %7306 = vmatpush3.bf16.xpose.msk.msra.mxu1 %vm7804_vm2, %v8088_v31 }
0x104d   : > { %7307 = vmatprep.subr.bf16.mxu1 %v9019_v0 }
0x1052   : > { %7294 = vmatpush3.bf16.xpose.msk.msra.mxu0 %vm7804_vm2, %v8102_v43 }
0x1053   : > { %7311 = vmatprep.subr.bf16.mxu0 %v9019_v0 }
0x1054   : > { %7310 = vmatpush3.bf16.xpose.msk.msra.mxu1 %vm7804_vm2, %v8104_v45 }
0x1055   : > { %7323 = vmatprep.subr.bf16.mxu1 %v9019_v0 }
0x1059   : > { %6508 = vmatmul.mubr.msk.f32.vlgmr.msra.gmra.mrb[40].mxu0 %vm411_vm1, %v4032_v5 }
0x105a   : > { %7313 = vmatpush3.bf16.msra.mxu0 %v7811_v39  ;;  %6545 = vmatprep.mubr.msk.f32.mxu0 %vm7639_vm0, %v9018_v18 }
0x105b   : > { %6527 = vmatmul.mubr.msk.f32.vlgmr.msra.gmra.mrb[42].mxu1 %vm411_vm1, %v4110_v34  ;;  %7314 = vmatprep.subr.bf16.mxu0 %v9019_v0 }
0x105c   : > { %7325 = vmatpush3.bf16.msra.mxu1 %v7814_v41  ;;  %6564 = vmatprep.mubr.msk.f32.mxu1 %vm7639_vm0, %v9018_v18 }
0x105d   : > { %7326 = vmatprep.subr.bf16.mxu1 %v9019_v0 }
0x105e   : > { %7316 = vmatpush3.bf16.msra.mxu0 %v7828_v46 }
0x105f   : > { %7317 = vmatprep.subr.bf16.mxu0 %v9019_v0 }
0x1060   : > { %7328 = vmatpush3.bf16.msra.mxu1 %v7830_v47 }
0x1061   : > { %7329 = vmatprep.subr.bf16.mxu1 %v9019_v0 }
0x1062   : > { %7319 = vmatpush3.bf16.msra.mxu0 %v7844_v52 }
0x1063   : > { %7320 = vmatprep.subr.bf16.mxu0 %v9019_v0 }
0x1064   : > { %7331 = vmatpush3.bf16.msra.mxu1 %v7846_v53 }
0x1065   : > { %7332 = vmatprep.subr.bf16.mxu1 %v9019_v0 }
0x1066   : > { %7322 = vmatpush3.bf16.msra.mxu0 %v7860_v58 }
0x1067   : > { %7335 = vmatprep.subr.bf16.mxu0 %v9019_v0 }
0x1068   : > { %7334 = vmatpush3.bf16.msra.mxu1 %v9022_v24 }
0x1069   : > { %7347 = vmatprep.subr.bf16.mxu1 %v9019_v0 }
0x10cc   : > { %v3633_v35 = vpop.f32.mrb[34].mxu0 }
0x10cd   : > { %v6395_v39 = vpop.f32.mrb[35].mxu0  ;;  %v4183_v41 = vsel %vm1222_vm3, %v3633_v35, -inf }
0x10ce   : > { %4184 = vmax.xlane.f32.xlu1 %v4183_v41  ;;  %v3711_v46 = vpop.f32.mrb[36].mxu1 }
0x10cf   : > { %v6414_v47 = vpop.f32.mrb[37].mxu1  ;;  %v4186_v52 = vsel %vm1222_vm3, %v3711_v46, -inf }
0x10d0   : > { %4187 = vmax.xlane.f32.xlu0 %v4186_v52 }
0x10ec   : > { %v3789_v53 = vpop.f32.mrb[36].mxu0 }
0x10ed   : > { %v6433_v51 = vpop.f32.mrb[37].mxu0  ;;  %v4189_v58 = vsel %vm1222_vm3, %v3789_v53, -inf }
0x10ee   : > { %4190 = vmax.xlane.f32.xlu0 %v4189_v58  ;;  %v3867_v25 = vpop.f32.mrb[38].mxu1 }
0x10ef   : > { %v6452_v4 = vpop.f32.mrb[39].mxu1  ;;  %v4192_v24 = vsel %vm1222_vm3, %v3867_v25, -inf }
0x10f0   : > { %4193 = vmax.xlane.f32.xlu1 %v4192_v24 }
0x110c   : > { %v3945_v7 = vpop.f32.mrb[38].mxu0 }
0x110d   : > { %v6471_v10 = vpop.f32.mrb[39].mxu0  ;;  %v4195_v13 = vsel %vm1222_vm3, %v3945_v7, -inf }
0x110e   : > { %4196 = vmax.xlane.f32.xlu0 %v4195_v13  ;;  %v4023_v16 = vpop.f32.mrb[40].mxu1 }
0x110f   : > { %v6490_v33 = vpop.f32.mrb[41].mxu1  ;;  %v4198_v8 = vsel %vm1222_vm3, %v4023_v16, -inf }
0x1110   : > { %4199 = vmax.xlane.f32.xlu1 %v4198_v8 }
0x112c   : > { %v4101_v40 = vpop.f32.mrb[40].mxu0 }
0x112d   : > { %v6509_v59 = vpop.f32.mrb[41].mxu0  ;;  %v4201_v15 = vsel %vm1222_vm3, %v4101_v40, -inf }
0x112e   : > { %4202 = vmax.xlane.f32.xlu0 %v4201_v15  ;;  %v4179_v19 = vpop.f32.mrb[42].mxu1 }
0x112f   : > { %v6528_v32 = vpop.f32.mrb[43].mxu1  ;;  %v4204_v48 = vsel %vm1222_vm3, %v4179_v19, -inf }
0x1130   : > { %4205 = vmax.xlane.f32.xlu1 %v4204_v48 }
0x115b   : > { %v4185_v26 = vpop.xlane.xlu1 %4184 }
0x115c   : > { %v4207_v9 = vsub.f32 %v3633_v35, %v4185_v26 }
0x115d   : > { %v4188_v27 = vpop.xlane.xlu0 %4187 }
0x115e   : > { %v4215_v56 = vmul.f32 1.442695, %v4207_v9  ;;  %v4208_v3 = vsub.f32 %v3711_v46, %v4188_v27 }
0x1160   : > { %7541 = vpow2.f32 %v4215_v56  ;;  %v4217_v11 = vmul.f32 1.442695, %v4208_v3 }
0x1162   : > { %7543 = vpow2.f32 %v4217_v11 }
0x116a   : > { %v7542_v36 = vpop.eup %7541 }
0x116b   : > { %v4231_v60 = vsel %vm1222_vm3, %v7542_v36, 0.0 }
0x116c   : > { %v7544_v1 = vpop.eup %7543  ;;  %4232 = vadd.xlane.f32.xlu0 %v4231_v60 }
0x116d   : > { %v4234_v6 = vsel %vm1222_vm3, %v7544_v1, 0.0 }
0x116e   : > { %4235 = vadd.xlane.f32.xlu1 %v4234_v6 }
0x117b   : > { %v4191_v57 = vpop.xlane.xlu0 %4190 }
0x117c   : > { %v4209_v5 = vsub.f32 %v3789_v53, %v4191_v57 }
0x117d   : > { %v4194_v34 = vpop.xlane.xlu1 %4193 }
0x117e   : > { %v4219_v39 = vmul.f32 1.442695, %v4209_v5  ;;  %v4210_v41 = vsub.f32 %v3867_v25, %v4194_v34 }
0x1180   : > { %7545 = vpow2.f32 %v4219_v39  ;;  %v4221_v35 = vmul.f32 1.442695, %v4210_v41 }
0x1182   : > { %7547 = vpow2.f32 %v4221_v35 }
0x118a   : > { %v8840_v46 = vpop.eup %7545 }
0x118b   : > { %v4237_v47 = vsel %vm1222_vm3, %v8840_v46, 0.0 }
0x118c   : > { %v8844_v52 = vpop.eup %7547  ;;  %4238 = vadd.xlane.f32.xlu0 %v4237_v47 }
0x118d   : > { %v4240_v51 = vsel %vm1222_vm3, %v8844_v52, 0.0 }
0x118e   : > { %4241 = vadd.xlane.f32.xlu1 %v4240_v51 }
0x119b   : > { %v4197_v58 = vpop.xlane.xlu0 %4196 }
0x119c   : > { %v4211_v53 = vsub.f32 %v3945_v7, %v4197_v58 }
0x119d   : > { %v4200_v4 = vpop.xlane.xlu1 %4199 }
0x119e   : > { %v4223_v24 = vmul.f32 1.442695, %v4211_v53  ;;  %v4212_v25 = vsub.f32 %v4023_v16, %v4200_v4 }
0x11a0   : > { %7549 = vpow2.f32 %v4223_v24  ;;  %v4225_v10 = vmul.f32 1.442695, %v4212_v25 }
0x11a2   : > { %7551 = vpow2.f32 %v4225_v10 }
0x11aa   : > { %v8848_v13 = vpop.eup %7549 }
0x11ab   : > { %v4243_v33 = vsel %vm1222_vm3, %v8848_v13, 0.0 }
0x11ac   : > { %v8852_v8 = vpop.eup %7551  ;;  %4244 = vadd.xlane.f32.xlu0 %v4243_v33 }
0x11ad   : > { %v4246_v59 = vsel %vm1222_vm3, %v8852_v8, 0.0 }
0x11ae   : > { %4247 = vadd.xlane.f32.xlu1 %v4246_v59 }
0x11bb   : > { %v4203_v15 = vpop.xlane.xlu0 %4202 }
0x11bc   : > { %v4213_v7 = vsub.f32 %v4101_v40, %v4203_v15 }
0x11bd   : > { %v4206_v32 = vpop.xlane.xlu1 %4205 }
0x11be   : > { %v4227_v48 = vmul.f32 1.442695, %v4213_v7  ;;  %v4214_v16 = vsub.f32 %v4179_v19, %v4206_v32 }
0x11c0   : > { %7553 = vpow2.f32 %v4227_v48  ;;  %v4229_v26 = vmul.f32 1.442695, %v4214_v16 }
0x11c2   : > { %7555 = vpow2.f32 %v4229_v26 }
0x11ca   : > { %v8856_v9 = vpop.eup %7553 }
0x11cb   : > { %v4249_v27 = vsel %vm1222_vm3, %v8856_v9, 0.0 }
0x11cc   : > { %v8860_v56 = vpop.eup %7555  ;;  %4250 = vadd.xlane.f32.xlu0 %v4249_v27 }
0x11cd   : > { %v4252_v3 = vsel %vm1222_vm3, %v8860_v56, 0.0 }
0x11ce   : > { %4253 = vadd.xlane.f32.xlu1 %v4252_v3 }
0x11e2   : > { %4855 = vrot.lane.b32.xlu0 %v8667_v17, %s7642_s6 }
0x11f9   : > { %v4233_v40 = vpop.xlane.xlu0 %4232 }
0x11fa   : > { %7557 = vrcp.f32 %v4233_v40 }
0x11fb   : > { %v4236_v19 = vpop.xlane.xlu1 %4235 }
0x11fc   : > { %7559 = vrcp.f32 %v4236_v19 }
0x1204   : > { %v7558_v11 = vpop.eup %7557 }
0x1205   : > { %v4256_v60 = vmul.f32 %v7558_v11, %v7542_v36 }
0x1206   : > { %v7560_v6 = vpop.eup %7559 }
0x1207   : > { %v4258_v57 = vmul.f32 %v7560_v6, %v7544_v1  ;;  %6546 = vmatmul.mubr.msk.f32.vlgmr.msra.gmra.mrb[42].mxu0 %vm1311_vm4, %v4256_v60 }
0x1208   : > { %7337 = vmatpush3.bf16.msra.mxu0 %v7908_v42  ;;  %6583 = vmatprep.mubr.msk.f32.mxu0 %vm7639_vm0, %v9018_v18 }
0x1209   : > { %6565 = vmatmul.mubr.msk.f32.vlgmr.msra.gmra.mrb[44].mxu1 %vm1311_vm4, %v4258_v57  ;;  %7338 = vmatprep.subr.bf16.mxu0 %v9019_v0 }
0x120a   : > { %7349 = vmatpush3.bf16.msra.mxu1 %v7910_v44  ;;  %6602 = vmatprep.mubr.msk.f32.mxu1 %vm7639_vm0, %v9018_v18 }
0x120b   : > { %7350 = vmatprep.subr.bf16.mxu1 %v9019_v0 }
0x120c   : > { %7340 = vmatpush3.bf16.msra.mxu0 %v7930_v54 }
0x120d   : > { %7341 = vmatprep.subr.bf16.mxu0 %v9019_v0 }
0x120e   : > { %7352 = vmatpush3.bf16.msra.mxu1 %v7932_v55 }
0x120f   : > { %7353 = vmatprep.subr.bf16.mxu1 %v9019_v0 }
0x1210   : > { %7343 = vmatpush3.bf16.msra.mxu0 %v7946_v62 }
0x1211   : > { %7344 = vmatprep.subr.bf16.mxu0 %v9019_v0 }
0x1212   : > { %7355 = vmatpush3.bf16.msra.mxu1 %v7948_v63 }
0x1213   : > { %7356 = vmatprep.subr.bf16.mxu1 %v9019_v0 }
0x1214   : > { %7346 = vmatpush3.bf16.msra.mxu0 %v7962_v12 }
0x1215   : > { %7359 = vmatprep.subr.bf16.mxu0 %v9019_v0 }
0x1216   : > { %7358 = vmatpush3.bf16.msra.mxu1 %v7964_v14 }
0x1217   : > { %7371 = vmatprep.subr.bf16.mxu1 %v9019_v0 }
0x1219   : > { %v4239_v42 = vpop.xlane.xlu0 %4238 }
0x121a   : > { %7561 = vrcp.f32 %v4239_v42 }
0x121b   : > { %v4242_v44 = vpop.xlane.xlu1 %4241 }
0x121c   : > { %7563 = vrcp.f32 %v4242_v44 }
0x1224   : > { %v7562_v54 = vpop.eup %7561 }
0x1225   : > { %v4260_v55 = vmul.f32 %v7562_v54, %v8840_v46 }
0x1226   : > { %v7564_v62 = vpop.eup %7563 }
0x1227   : > { %v4262_v63 = vmul.f32 %v7564_v62, %v8844_v52  ;;  %6584 = vmatmul.mubr.msk.f32.vlgmr.msra.gmra.mrb[44].mxu0 %vm1311_vm4, %v4260_v55 }
0x1228   : > { %7361 = vmatpush3.bf16.msra.mxu0 %v7978_v21  ;;  %6621 = vmatprep.mubr.msk.f32.mxu0 %vm7639_vm0, %v9018_v18 }
0x1229   : > { %6603 = vmatmul.mubr.msk.f32.vlgmr.msra.gmra.mrb[46].mxu1 %vm1311_vm4, %v4262_v63  ;;  %7362 = vmatprep.subr.bf16.mxu0 %v9019_v0 }
0x122a   : > { %7373 = vmatpush3.bf16.msra.mxu1 %v7980_v23  ;;  %6640 = vmatprep.mubr.msk.f32.mxu1 %vm7639_vm0, %v9018_v18 }
0x122b   : > { %7374 = vmatprep.subr.bf16.mxu1 %v9019_v0 }
0x122c   : > { %7364 = vmatpush3.bf16.msra.mxu0 %v8000_v29 }
0x122d   : > { %7365 = vmatprep.subr.bf16.mxu0 %v9019_v0 }
0x122e   : > { %7376 = vmatpush3.bf16.msra.mxu1 %v8002_v30 }
0x122f   : > { %7377 = vmatprep.subr.bf16.mxu1 %v9019_v0 }
0x1230   : > { %7367 = vmatpush3.bf16.msra.mxu0 %v8016_v37 }
0x1231   : > { %7368 = vmatprep.subr.bf16.mxu0 %v9019_v0 }
0x1232   : > { %7379 = vmatpush3.bf16.msra.mxu1 %v8018_v38 }
0x1233   : > { %7380 = vmatprep.subr.bf16.mxu1 %v9019_v0 }
0x1234   : > { %7370 = vmatpush3.bf16.msra.mxu0 %v8032_v49 }
0x1235   : > { %7383 = vmatprep.subr.bf16.mxu0 %v9019_v0 }
0x1236   : > { %7382 = vmatpush3.bf16.msra.mxu1 %v8034_v50 }
0x1237   : > { %7395 = vmatprep.subr.bf16.mxu1 %v9019_v0 }
0x1239   : > { %v4245_v12 = vpop.xlane.xlu0 %4244 }
0x123a   : > { %7565 = vrcp.f32 %v4245_v12 }
0x123b   : > { %v4248_v14 = vpop.xlane.xlu1 %4247 }
0x123c   : > { %7567 = vrcp.f32 %v4248_v14 }
0x1244   : > { %v7566_v21 = vpop.eup %7565 }
0x1245   : > { %v4264_v23 = vmul.f32 %v7566_v21, %v8848_v13 }
0x1246   : > { %v7568_v29 = vpop.eup %7567 }
0x1247   : > { %v4266_v30 = vmul.f32 %v7568_v29, %v8852_v8  ;;  %6622 = vmatmul.mubr.msk.f32.vlgmr.msra.gmra.mrb[46].mxu0 %vm1311_vm4, %v4264_v23 }
0x1248   : > { %7385 = vmatpush3.bf16.msra.mxu0 %v8048_v61  ;;  %6659 = vmatprep.mubr.msk.f32.mxu0 %vm7639_vm0, %v9018_v18 }
0x1249   : > { %6641 = vmatmul.mubr.msk.f32.vlgmr.msra.gmra.mrb[48].mxu1 %vm1311_vm4, %v4266_v30  ;;  %7386 = vmatprep.subr.bf16.mxu0 %v9019_v0 }
0x124a   : > { %7397 = vmatpush3.bf16.msra.mxu1 %v8050_v2  ;;  %6678 = vmatprep.mubr.msk.f32.mxu1 %vm7639_vm0, %v9018_v18 }
0x124b   : > { %7398 = vmatprep.subr.bf16.mxu1 %v9019_v0 }
0x124c   : > { %7388 = vmatpush3.bf16.msra.mxu0 %v8070_v20 }
0x124d   : > { %7389 = vmatprep.subr.bf16.mxu0 %v9019_v0 }
0x124e   : > { %7400 = vmatpush3.bf16.msra.mxu1 %v8072_v22 }
0x124f   : > { %7401 = vmatprep.subr.bf16.mxu1 %v9019_v0 }
0x1250   : > { %7391 = vmatpush3.bf16.msra.mxu0 %v8086_v28 }
0x1251   : > { %7392 = vmatprep.subr.bf16.mxu0 %v9019_v0 }
0x1252   : > { %7403 = vmatpush3.bf16.msra.mxu1 %v8088_v31 }
0x1253   : > { %7404 = vmatprep.subr.bf16.mxu1 %v9019_v0 }
0x1254   : > { %7394 = vmatpush3.bf16.msra.mxu0 %v8102_v43 }
0x1256   : > { %7406 = vmatpush3.bf16.msra.mxu1 %v8104_v45 }
0x1259   : > { %v4251_v37 = vpop.xlane.xlu0 %4250 }
0x125a   : > { %7569 = vrcp.f32 %v4251_v37 }
0x125b   : > { %v4254_v38 = vpop.xlane.xlu1 %4253 }
0x125c   : > { %7571 = vrcp.f32 %v4254_v38 }
0x125d   : > { %v4856_v15 = vpop.permute.xlu0 %4855 }
0x1264   : > { %v7570_v49 = vpop.eup %7569 }
0x1265   : > { %v4268_v50 = vmul.f32 %v7570_v49, %v8856_v9 }
0x1266   : > { %v7572_v61 = vpop.eup %7571 }
0x1267   : > { %v4270_v2 = vmul.f32 %v7572_v61, %v8860_v56  ;;  %6660 = vmatmul.mubr.msk.f32.vlgmr.msra.gmra.mrb[48].mxu0 %vm1311_vm4, %v4268_v50 }
0x1269   : > { %6679 = vmatmul.mubr.msk.f32.vlgmr.msra.gmra.mrb[50].mxu1 %vm1311_vm4, %v4270_v2 }
0x12da   : > { %v4340_v20 = vpop.f32.mrb[42].mxu0 }
0x12db   : > { %v6547_v22 = vpop.f32.mrb[43].mxu0 }
0x12dc   : > { %v4413_v28 = vpop.f32.mrb[44].mxu1 }
0x12dd   : > { %v4866_v31 = vrot.slane %v4413_v28, 7  ;;  %v6566_v43 = vpop.f32.mrb[45].mxu1 }
0x12df   : > { %v4867_v45 = vsel %vm1908_vm5, %v4866_v31, %v4340_v20 }
0x12fa   : > { %v4486_v18 = vpop.f32.mrb[44].mxu0 }
0x12fb   : > { %v4868_v0 = vrot.slane %v4486_v18, 6  ;;  %v6585_v17 = vpop.f32.mrb[45].mxu0 }
0x12fc   : > { %v4559_v36 = vpop.f32.mrb[46].mxu1 }
0x12fd   : > { %v4869_v1 = vsel %vm1911_vm6, %v4868_v0, %v4867_v45  ;;  %v4870_v5 = vrot.slane %v4559_v36, 5  ;;  %v6604_v34 = vpop.f32.mrb[47].mxu1 }
0x12ff   : > { %v4871_v39 = vsel %vm1914_vm7, %v4870_v5, %v4869_v1 }
0x131a   : > { %v4632_v41 = vpop.f32.mrb[46].mxu0 }
0x131b   : > { %v4872_v35 = vrot.slane %v4632_v41, 4  ;;  %v6623_v46 = vpop.f32.mrb[47].mxu0 }
0x131c   : > { %v4705_v47 = vpop.f32.mrb[48].mxu1 }
0x131d   : > { %v4873_v52 = vsel %vm1917_vm8, %v4872_v35, %v4871_v39  ;;  %v4874_v51 = vrot.slane %v4705_v47, 3  ;;  %v6642_v58 = vpop.f32.mrb[49].mxu1 }
0x131f   : > { %v4875_v53 = vsel %vm1920_vm9, %v4874_v51, %v4873_v52 }
0x133a   : > { %v4778_v4 = vpop.f32.mrb[48].mxu0 }
0x133b   : > { %v4876_v24 = vrot.slane %v4778_v4, 2  ;;  %v6661_v25 = vpop.f32.mrb[49].mxu0 }
0x133c   : > { %v4851_v10 = vpop.f32.mrb[50].mxu1 }
0x133d   : > { %v4878_v13 = vrot.slane %v4851_v10, 1  ;;  %v6680_v33 = vpop.f32.mrb[51].mxu1  ;;  %v4877_v8 = vsel %vm1923_vm10, %v4876_v24, %v4875_v53 }
0x133f   : > { %v4879_v59 = vsel %vm1926_vm11, %v4878_v13, %v4877_v8 }
0x1340   : > { %4880 = vrot.lane.b32.xlu1 %v4879_v59, %s7642_s6  ;;  %s7645_s6 = smov [#allocation2]  }
0x1341   : > { %s7578_s7 = sshll.u32 %s7645_s6, 4  ;;  %s7579_s7 = int_to_ptr.vmem [resolvable:$false] %s7578_s7 }
0x1342   : > { %s7580_s8 = scalar_lea.vmem %s7579_s7, 256  ;;  %p7581_p0 = scmp.lt.s32.totalorder %s8953_s28, %s7579_s7 }
0x1343   : > { %p7582_p1 = scmp.lt.s32.totalorder %s7580_s8, %s7574_s16 }
0x1345   : > { %p7583_p2 = por %p7582_p1, %p7581_p0 }
0x1347   : > { %p7584_p3 = pnand %p7583_p2, %p7577_p13 }
0x13b2   : > { %v4881_v7 = vpop.permute.xlu1 %4880 }
0x13b3   : > { %v4883_v32 = vsel %vm411_vm1, %v4856_v15, %v4881_v7 }
0x13b4   : > { %4884 = vst.msk [vmem:[%s166_s27] sm:$0xff] %vm1311_vm4, %v4883_v32 }
0x13b5   : > { %7587 = shalt.err (!%p7584_p3)
}
0x13b6   : > { %s7588_s9 = scalar_lea.hbm %s8951_s4, 128  ;;  %s7592_s17 = scalar_lea.hbm %s8998_s3, 256 }
0x13b7   : > { %p7589_p4 = scmp.ne.s32.totalorder %s8951_s4, %s7588_s9  ;;  %p7593_p9 = scmp.lt.u32.totalorder %s8951_s4, %s8998_s3 }
0x13b8   : > { %p7594_p10 = scmp.lt.u32.totalorder %s7592_s17, %s7588_s9  ;;  %p7596_p12 = scmp.lt.u32.totalorder %s7588_s9, %s8951_s4 }
0x13b9   : > { %p7590_p7 = pnand %p7589_p4, %p7704_p5 }
0x13ba   : > { %p7595_p11 = por %p7594_p10, %p7593_p9 }
0x13bb   : > { %p7591_p8 = pneg %p7590_p7 }
0x13bc   : > { %p7597_p13 = por %p7596_p12, %p7595_p11 }
0x13be   : > { %p7598_p0 = pnand %p7597_p13, %p7591_p8 }
0x13c0   : > { %7601 = shalt.err (!%p7598_p0)
}
0x13c1   : > { %7407 = dma.vmem_to_hbm [thread:$0]  (%p7704_p5), %s8953_s28, 128, %s8951_s4, %s4886_s5  }
0x13c2 PF: > { %p7413_p1 = scmp.ge.s32.totalorder %s7636_s15, 2  ;;  %s4911_s24 = sand.u32 1, %s7624_s12  }
0x13c3   : > { %s4912_s25 = scalar_lea.sflag [#allocation3], %s4911_s24 }
0x13c4   : > { %p7410_p2 = pnand %p7413_p1, %p7708_p6 }
0x13c6   : > { %7619 = dma.done.wait (!%p7410_p2), %s4912_s25, 128  }
0x13c7   : > { %7621 = vsyncadd (!%p7410_p2), %s4912_s25, 4294967168  ;;  %p13_p3 = scmp.ge.s32.totalorder %s7691_s18, 4   ;;  %s9027_s12 = smov %s7628_s13 }
0x13c8   : > { %s9028_s13 = smov %s7632_s14  ;;  %s9029_s14 = smov %s7702_s21 }
0x13c9   : > { %s9030_s15 = smov %s7691_s18  ;;  %15 = sbr.rel (!%p13_p3) target bundleno = 3 (0x3), region = 67 }
0x13d0   :  { %4917 = vsyncpa [#allocation3], 1 }
0x13d1   :  { %4919 = vsyncpa [#allocation3 + $0x1], 1 }

</bundles_post_ra>
